<compile_context>
chip_gen: v5e
topology: v5e:2x2
jax: 0.10.0
libtpu: 0.0.40
codegen_flags: <defaults>
</compile_context>

<pallas_src>
import functools
import math

import jax
import jax.numpy as jnp
import numpy as np
from jax.experimental import pallas as pl
from jax.experimental.pallas import tpu as pltpu

EPS = 1e-6
NEG_INF = -1e30

# row indices inside the packed (NV, 1, D) parameter-vector array
(_X_LN_W, _X_LN_B, _DEC_LN_W, _DEC_LN_B, _FF_LN_W, _FF_LN_B,
 _TT_BQ, _TT_BK, _TT_BV, _TT_BO,
 _ST_BQ, _ST_BK, _ST_BV, _ST_BO,
 _FF_B2) = range(15)
_NV = 15


# ----------------------------- in-kernel helpers -----------------------------

def _layer_norm(x, w, b):
    # x: (N, D) fp32, w/b: (1, D)  -- kept fully fp32
    mean = jnp.mean(x, axis=-1, keepdims=True)
    var = jnp.mean((x - mean) ** 2, axis=-1, keepdims=True)
    return (x - mean) * jax.lax.rsqrt(var + EPS) * w + b


def _mha_core(q, k, v, add_mask, num_heads):
    # q: (TQ, D) fp32, k/v: (S, D) fp32, add_mask: additive fp32 mask -> (TQ, S)
    TQ, D = q.shape
    hd = D // num_heads
    scale = 1.0 / math.sqrt(hd)

    def split_heads(a):
        # (N, D) -> (H, N, hd): leading-dim stack of lane slices (no lane reshapes)
        return jnp.concatenate(
            [a[None, :, h * hd:(h + 1) * hd] for h in range(num_heads)], axis=0)

    # bf16 into the MXU, fp32 accumulation
    qh = (split_heads(q) * scale).astype(jnp.bfloat16)   # (H, TQ, hd)
    kh = split_heads(k).astype(jnp.bfloat16)              # (H, S, hd)
    vh = split_heads(v).astype(jnp.bfloat16)               # (H, S, hd)

    s = jnp.einsum("htd,hsd->hts", qh, kh, preferred_element_type=jnp.float32)
    s = s + add_mask[None]                 # head-invariant additive mask (fp32)
    s = s - jnp.max(s, axis=-1, keepdims=True)
    p = jnp.exp(s)
    # softmax denominator via EUP approximate reciprocal (frees the VALU divide)
    p = p * pl.reciprocal(jnp.sum(p, axis=-1, keepdims=True), approx=True)
    ctx = jnp.einsum("hts,hsd->htd", p.astype(jnp.bfloat16), vh,
                     preferred_element_type=jnp.float32)
    return jnp.concatenate([ctx[h] for h in range(num_heads)], axis=-1)   # (TQ, D)


# --------------------------------- fused kernel --------------------------------

def _decoder_layer_kernel(num_heads,
                          x_tile_ref, x_full_ref, mem_ref,
                          trg_mask_ref, src_mask_ref,
                          vecs_ref, ff_b1_ref,
                          tt_wq_ref, tt_wkv_ref, tt_wo_ref,
                          st_wq_ref, st_wkv_ref, st_wo_ref,
                          ff_w1_ref, ff_w2_ref,
                          out_ref):
    x_t = x_tile_ref[0].astype(jnp.float32)     # (TQ, D) query tile
    x_f = x_full_ref[0].astype(jnp.float32)     # (T, D) full target (self-attn K/V)
    mem = mem_ref[0].astype(jnp.float32)        # (S, D)
    D = x_t.shape[-1]

    def vrow(i):                                # packed LN weights / biases, (1, D)
        return vecs_ref[i].astype(jnp.float32)

    def bf16(a):
        return a.astype(jnp.bfloat16)

    # additive masks computed once per kernel invocation (head invariant, fp32).
    # NOTE: a fully-masked row softmaxes to a uniform distribution (same as reference).
    trg_add = jnp.where(trg_mask_ref[0] > 0, 0.0, NEG_INF)   # (TQ, T)
    src_add = jnp.where(src_mask_ref[0] > 0, 0.0, NEG_INF)   # (1, S)

    # ---- trg-trg self attention + residual (Q from tile, fused K/V of full x) ----
    xn_t = _layer_norm(x_t, vrow(_X_LN_W), vrow(_X_LN_B))
    xn_f = _layer_norm(x_f, vrow(_X_LN_W), vrow(_X_LN_B))
    q = jnp.dot(bf16(xn_t), tt_wq_ref[...],
                preferred_element_type=jnp.float32) + vrow(_TT_BQ)            # (TQ, D)
    kv = jnp.dot(bf16(xn_f), tt_wkv_ref[...],
                 preferred_element_type=jnp.float32)                          # (T, 2D)
    k = kv[:, :D] + vrow(_TT_BK)
    v = kv[:, D:] + vrow(_TT_BV)
    ctx = _mha_core(q, k, v, trg_add, num_heads)
    h1 = jnp.dot(bf16(ctx), tt_wo_ref[...],
                 preferred_element_type=jnp.float32) + vrow(_TT_BO) + x_t

    # ---- src-trg cross attention + residual (fused K/V projection of memory) ----
    h1n = _layer_norm(h1, vrow(_DEC_LN_W), vrow(_DEC_LN_B))
    q2 = jnp.dot(bf16(h1n), st_wq_ref[...],
                 preferred_element_type=jnp.float32) + vrow(_ST_BQ)
    kv2 = jnp.dot(bf16(mem), st_wkv_ref[...],
                  preferred_element_type=jnp.float32)                         # (S, 2D)
    k2 = kv2[:, :D] + vrow(_ST_BK)
    v2 = kv2[:, D:] + vrow(_ST_BV)
    ctx2 = _mha_core(q2, k2, v2, src_add, num_heads)
    h2 = jnp.dot(bf16(ctx2), st_wo_ref[...],
                 preferred_element_type=jnp.float32) + vrow(_ST_BO) + h1

    # ---- position-wise FFN + residual ----
    h2n = _layer_norm(h2, vrow(_FF_LN_W), vrow(_FF_LN_B))
    f = jnp.maximum(
        jnp.dot(bf16(h2n), ff_w1_ref[...],
                preferred_element_type=jnp.float32) + ff_b1_ref[...], 0.0)
    o = jnp.dot(bf16(f), ff_w2_ref[...],
                preferred_element_type=jnp.float32) + vrow(_FF_B2) + h2

    out_ref[0] = o.astype(out_ref.dtype)


# --------------------------- one-time parameter packing ------------------------

def pack_decoder_params(p, weight_dtype=jnp.bfloat16):
    """One-time parameter preparation (off the per-step critical path):
    pack all D-sized LN weights / biases into one array (one DMA), fuse the
    K/V projection weights, and cast every MXU-facing weight matrix to bf16."""
    vecs = jnp.stack([
        p["x_ln_w"], p["x_ln_b"], p["dec_ln_w"], p["dec_ln_b"],
        p["ff_ln_w"], p["ff_ln_b"],
        p["tt_bq"], p["tt_bk"], p["tt_bv"], p["tt_bo"],
        p["st_bq"], p["st_bk"], p["st_bv"], p["st_bo"],
        p["ff_b2"],
    ], axis=0).astype(jnp.float32)                                    # (NV, 1, D)
    return {
        "vecs": vecs,
        "ff_b1": p["ff_b1"].astype(jnp.float32),                      # (1, F)
        "tt_wq": p["tt_wq"].astype(weight_dtype),                     # (D, D)
        "tt_wkv": jnp.concatenate([p["tt_wk"], p["tt_wv"]],
                                  axis=1).astype(weight_dtype),       # (D, 2D)
        "tt_wo": p["tt_wo"].astype(weight_dtype),                     # (D, D)
        "st_wq": p["st_wq"].astype(weight_dtype),                     # (D, D)
        "st_wkv": jnp.concatenate([p["st_wk"], p["st_wv"]],
                                  axis=1).astype(weight_dtype),       # (D, 2D)
        "st_wo": p["st_wo"].astype(weight_dtype),                     # (D, D)
        "ff_w1": p["ff_w1"].astype(weight_dtype),                     # (D, F)
        "ff_w2": p["ff_w2"].astype(weight_dtype),                     # (F, D)
    }


# ------------------------------- pallas_call glue ------------------------------

def transformer_decoder_layer(x, memory, src_mask, trg_mask, packed, num_heads,
                              q_tile=None):
    """Forward pass of the Transformer decoder layer (dropout = identity)."""
    B, T, D = x.shape
    S = memory.shape[1]
    F = packed["ff_b1"].shape[1]

    TQ = T if q_tile is None else min(q_tile, T)
    assert T % TQ == 0 and (TQ % 8 == 0 or TQ == T), "query tile must be 8-aligned"
    n_q = T // TQ

    def wspec(d1, d2):
        # grid-invariant weight: constant block index over the whole grid, so a
        # single buffer suffices (halves weight VMEM residency at zero cost).
        return pl.BlockSpec((d1, d2), lambda b, qi: (0, 0),
                            pipeline_mode=pl.Buffered(1))

    in_specs = [
        pl.BlockSpec((1, TQ, D), lambda b, qi: (b, qi, 0)),    # x (query tile)
        pl.BlockSpec((1, T, D), lambda b, qi: (b, 0, 0)),      # x (full, self-attn K/V)
        pl.BlockSpec((1, S, D), lambda b, qi: (b, 0, 0)),      # memory
        pl.BlockSpec((1, TQ, T), lambda b, qi: (b, qi, 0)),    # trg_mask (query tile)
        pl.BlockSpec((1, 1, S), lambda b, qi: (b, 0, 0)),      # src_mask
        pl.BlockSpec((_NV, 1, D), lambda b, qi: (0, 0, 0),
                     pipeline_mode=pl.Buffered(1)),            # packed LN w/b + biases
        wspec(1, F),                                           # ff_b1
        wspec(D, D), wspec(D, 2 * D), wspec(D, D),             # tt_wq, tt_wkv, tt_wo
        wspec(D, D), wspec(D, 2 * D), wspec(D, D),             # st_wq, st_wkv, st_wo
        wspec(D, F), wspec(F, D),                              # ff_w1, ff_w2
    ]

    return pl.pallas_call(
        functools.partial(_decoder_layer_kernel, num_heads),
        out_shape=jax.ShapeDtypeStruct((B, T, D), x.dtype),
        grid=(B, n_q),
        in_specs=in_specs,
        out_specs=pl.BlockSpec((1, TQ, D), lambda b, qi: (b, qi, 0)),
        compiler_params=pltpu.CompilerParams(
            dimension_semantics=("parallel", "parallel"),
            vmem_limit_bytes=48 * 1024 * 1024),   # safe headroom on v7x's 64 MiB
    )(x, x, memory, trg_mask, src_mask,
      packed["vecs"], packed["ff_b1"],
      packed["tt_wq"], packed["tt_wkv"], packed["tt_wo"],
      packed["st_wq"], packed["st_wkv"], packed["st_wo"],
      packed["ff_w1"], packed["ff_w2"])


# ------------------------------ pure-JAX reference ----------------------------

def _ref_ln(x, w, b):
    m = jnp.mean(x, axis=-1, keepdims=True)
    v = jnp.mean((x - m) ** 2, axis=-1, keepdims=True)
    return (x - m) * jax.lax.rsqrt(v + EPS) * w + b


def _ref_mha(q_in, k_in, v_in, mask, wq, bq, wk, bk, wv, bv, wo, bo, H):
    B, T, D = q_in.shape
    S = k_in.shape[1]
    hd = D // H
    q = (q_in @ wq + bq).reshape(B, T, H, hd).transpose(0, 2, 1, 3) / (hd ** 0.5)
    k = (k_in @ wk + bk).reshape(B, S, H, hd).transpose(0, 2, 1, 3)
    v = (v_in @ wv + bv).reshape(B, S, H, hd).transpose(0, 2, 1, 3)
    s = jnp.einsum("bhtd,bhsd->bhts", q, k)
    s = jnp.where(mask[:, None] > 0, s, NEG_INF)
    p = jax.nn.softmax(s, axis=-1)
    c = jnp.einsum("bhts,bhsd->bhtd", p, v).transpose(0, 2, 1, 3).reshape(B, T, D)
    return c @ wo + bo


def _ref_forward(x, memory, src_mask, trg_mask, p, H):
    xn = _ref_ln(x, p["x_ln_w"], p["x_ln_b"])
    h1 = _ref_mha(xn, xn, xn, trg_mask, p["tt_wq"], p["tt_bq"], p["tt_wk"], p["tt_bk"],
                  p["tt_wv"], p["tt_bv"], p["tt_wo"], p["tt_bo"], H) + x
    h1n = _ref_ln(h1, p["dec_ln_w"], p["dec_ln_b"])
    h2 = _ref_mha(h1n, memory, memory, src_mask, p["st_wq"], p["st_bq"], p["st_wk"],
                  p["st_bk"], p["st_wv"], p["st_bv"], p["st_wo"], p["st_bo"], H) + h1
    h2n = _ref_ln(h2, p["ff_ln_w"], p["ff_ln_b"])
    return jnp.maximum(h2n @ p["ff_w1"] + p["ff_b1"], 0.0) @ p["ff_w2"] + p["ff_b2"] + h2


# ----------------------------------- main -------------------------------------

if __name__ == "__main__":
    B, T, S, D, H, F = 2, 16, 8, 32, 4, 64
    key = jax.random.PRNGKey(0)
    ks = jax.random.split(key, 24)

    def mat(k, shape):
        return jax.random.normal(k, shape, jnp.float32) * 0.1

    params = {
        "x_ln_w": jnp.ones((1, D), jnp.float32), "x_ln_b": jnp.zeros((1, D), jnp.float32),
        "dec_ln_w": jnp.ones((1, D), jnp.float32), "dec_ln_b": jnp.zeros((1, D), jnp.float32),
        "ff_ln_w": jnp.ones((1, D), jnp.float32), "ff_ln_b": jnp.zeros((1, D), jnp.float32),
        # trg-trg attention (weights stored as (in, out))
        "tt_wq": mat(ks[0], (D, D)), "tt_bq": mat(ks[1], (1, D)),
        "tt_wk": mat(ks[2], (D, D)), "tt_bk": mat(ks[3], (1, D)),
        "tt_wv": mat(ks[4], (D, D)), "tt_bv": mat(ks[5], (1, D)),
        "tt_wo": mat(ks[6], (D, D)), "tt_bo": mat(ks[7], (1, D)),
        # src-trg attention
        "st_wq": mat(ks[8], (D, D)), "st_bq": mat(ks[9], (1, D)),
        "st_wk": mat(ks[10], (D, D)), "st_bk": mat(ks[11], (1, D)),
        "st_wv": mat(ks[12], (D, D)), "st_bv": mat(ks[13], (1, D)),
        "st_wo": mat(ks[14], (D, D)), "st_bo": mat(ks[15], (1, D)),
        # feed-forward
        "ff_w1": mat(ks[16], (D, F)), "ff_b1": mat(ks[17], (1, F)),
        "ff_w2": mat(ks[18], (F, D)), "ff_b2": mat(ks[19], (1, D)),
    }

    x = jax.random.normal(ks[20], (B, T, D), jnp.float32)
    memory = jax.random.normal(ks[21], (B, S, D), jnp.float32)
    # causal target mask (B, T, T); source mask (B, 1, S) with last 2 positions of batch 1 masked
    trg_mask = jnp.tril(jnp.ones((T, T), jnp.float32))[None].repeat(B, axis=0)
    src_mask = jnp.ones((B, 1, S), jnp.float32)
    src_mask = src_mask.at[1, 0, S - 2:].set(0.0)

    # one-time parameter packing / bf16 cast (off the per-step path)
    packed = pack_decoder_params(params)

    out = transformer_decoder_layer(x, memory, src_mask, trg_mask, packed, H, q_tile=8)
    out = jax.block_until_ready(out)

    ref = jax.block_until_ready(_ref_forward(x, memory, src_mask, trg_mask, params, H))
    # bf16 MXU inputs (fp32 accumulation) -> slightly looser tolerance than pure fp32
    np.testing.assert_allclose(np.asarray(out), np.asarray(ref), rtol=2e-2, atol=2e-2)

    print("KERNEL_OK")
</pallas_src>

<mosaic_0001>
module attributes {stable_mosaic.version = 11 : i64} {
  func.func @_decoder_layer_kernel(%arg0: i32, %arg1: i32, %arg2: memref<1x8x32xf32, #tpu.memory_space<vmem>>, %arg3: memref<1x16x32xf32, #tpu.memory_space<vmem>>, %arg4: memref<1x8x32xf32, #tpu.memory_space<vmem>>, %arg5: memref<1x8x16xf32, #tpu.memory_space<vmem>>, %arg6: memref<1x1x8xf32, #tpu.memory_space<vmem>>, %arg7: memref<15x1x32xf32, #tpu.memory_space<vmem>>, %arg8: memref<1x64xf32, #tpu.memory_space<vmem>>, %arg9: memref<32x32xbf16, #tpu.memory_space<vmem>>, %arg10: memref<32x64xbf16, #tpu.memory_space<vmem>>, %arg11: memref<32x32xbf16, #tpu.memory_space<vmem>>, %arg12: memref<32x32xbf16, #tpu.memory_space<vmem>>, %arg13: memref<32x64xbf16, #tpu.memory_space<vmem>>, %arg14: memref<32x32xbf16, #tpu.memory_space<vmem>>, %arg15: memref<32x64xbf16, #tpu.memory_space<vmem>>, %arg16: memref<64x32xbf16, #tpu.memory_space<vmem>>, %arg17: memref<1x8x32xf32, #tpu.memory_space<vmem>>) attributes {dimension_semantics = [#tpu.dimension_semantics<parallel>, #tpu.dimension_semantics<parallel>], iteration_bounds = array<i64: 2, 2>, scalar_prefetch = 0 : i64, scratch_operands = 0 : i64, tpu.core_type = #tpu.core_type<tc>, window_params = [{transform_indices = @transform_0, window_bounds = array<i64: 1, 8, 32>}, {transform_indices = @transform_1, window_bounds = array<i64: 1, 16, 32>}, {transform_indices = @transform_2, window_bounds = array<i64: 1, 8, 32>}, {transform_indices = @transform_3, window_bounds = array<i64: 1, 8, 16>}, {transform_indices = @transform_4, window_bounds = array<i64: 1, 1, 8>}, {pipeline_mode = #tpu.pipeline_mode<synchronous>, transform_indices = @transform_5, window_bounds = array<i64: 15, 1, 32>}, {pipeline_mode = #tpu.pipeline_mode<synchronous>, transform_indices = @transform_6, window_bounds = array<i64: 1, 64>}, {pipeline_mode = #tpu.pipeline_mode<synchronous>, transform_indices = @transform_7, window_bounds = array<i64: 32, 32>}, {pipeline_mode = #tpu.pipeline_mode<synchronous>, transform_indices = @transform_8, window_bounds = array<i64: 32, 64>}, {pipeline_mode = #tpu.pipeline_mode<synchronous>, transform_indices = @transform_9, window_bounds = array<i64: 32, 32>}, {pipeline_mode = #tpu.pipeline_mode<synchronous>, transform_indices = @transform_10, window_bounds = array<i64: 32, 32>}, {pipeline_mode = #tpu.pipeline_mode<synchronous>, transform_indices = @transform_11, window_bounds = array<i64: 32, 64>}, {pipeline_mode = #tpu.pipeline_mode<synchronous>, transform_indices = @transform_12, window_bounds = array<i64: 32, 32>}, {pipeline_mode = #tpu.pipeline_mode<synchronous>, transform_indices = @transform_13, window_bounds = array<i64: 32, 64>}, {pipeline_mode = #tpu.pipeline_mode<synchronous>, transform_indices = @transform_14, window_bounds = array<i64: 64, 32>}, {transform_indices = @transform_15, window_bounds = array<i64: 1, 8, 32>}]} {
    %c0 = arith.constant 0 : index
    %c0_0 = arith.constant 0 : index
    %c0_1 = arith.constant 0 : index
    %0 = vector.load %arg2[%c0, %c0_0, %c0_1] : memref<1x8x32xf32, #tpu.memory_space<vmem>>, vector<1x8x32xf32>
    %1 = vector.shape_cast %0 : vector<1x8x32xf32> to vector<8x32xf32>
    %c0_2 = arith.constant 0 : index
    %c0_3 = arith.constant 0 : index
    %c0_4 = arith.constant 0 : index
    %2 = vector.load %arg3[%c0_2, %c0_3, %c0_4] : memref<1x16x32xf32, #tpu.memory_space<vmem>>, vector<1x16x32xf32>
    %3 = vector.shape_cast %2 : vector<1x16x32xf32> to vector<16x32xf32>
    %c0_5 = arith.constant 0 : index
    %c0_6 = arith.constant 0 : index
    %c0_7 = arith.constant 0 : index
    %4 = vector.load %arg4[%c0_5, %c0_6, %c0_7] : memref<1x8x32xf32, #tpu.memory_space<vmem>>, vector<1x8x32xf32>
    %5 = vector.shape_cast %4 : vector<1x8x32xf32> to vector<8x32xf32>
    %c0_8 = arith.constant 0 : index
    %c0_9 = arith.constant 0 : index
    %c0_10 = arith.constant 0 : index
    %6 = vector.load %arg5[%c0_8, %c0_9, %c0_10] : memref<1x8x16xf32, #tpu.memory_space<vmem>>, vector<1x8x16xf32>
    %7 = vector.shape_cast %6 : vector<1x8x16xf32> to vector<8x16xf32>
    %cst = arith.constant 0.000000e+00 : f32
    %8 = vector.broadcast %cst : f32 to vector<8x16xf32>
    %9 = arith.cmpf ogt, %7, %8 : vector<8x16xf32>
    %cst_11 = arith.constant 0.000000e+00 : f32
    %cst_12 = arith.constant -1.000000e+30 : f32
    %10 = vector.broadcast %cst_11 : f32 to vector<8x16xf32>
    %11 = vector.broadcast %cst_12 : f32 to vector<8x16xf32>
    %12 = arith.select %9, %10, %11 : vector<8x16xi1>, vector<8x16xf32>
    %c0_13 = arith.constant 0 : index
    %c0_14 = arith.constant 0 : index
    %c0_15 = arith.constant 0 : index
    %13 = vector.load %arg6[%c0_13, %c0_14, %c0_15] : memref<1x1x8xf32, #tpu.memory_space<vmem>>, vector<1x1x8xf32>
    %14 = vector.shape_cast %13 : vector<1x1x8xf32> to vector<1x8xf32>
    %cst_16 = arith.constant 0.000000e+00 : f32
    %15 = vector.broadcast %cst_16 : f32 to vector<1x8xf32>
    %16 = arith.cmpf ogt, %14, %15 : vector<1x8xf32>
    %cst_17 = arith.constant 0.000000e+00 : f32
    %cst_18 = arith.constant -1.000000e+30 : f32
    %17 = vector.broadcast %cst_17 : f32 to vector<1x8xf32>
    %18 = vector.broadcast %cst_18 : f32 to vector<1x8xf32>
    %19 = arith.select %16, %17, %18 : vector<1x8xi1>, vector<1x8xf32>
    %c0_19 = arith.constant 0 : index
    %c0_20 = arith.constant 0 : index
    %c0_21 = arith.constant 0 : index
    %20 = vector.load %arg7[%c0_19, %c0_20, %c0_21] : memref<15x1x32xf32, #tpu.memory_space<vmem>>, vector<1x1x32xf32>
    %21 = vector.shape_cast %20 : vector<1x1x32xf32> to vector<1x32xf32>
    %c1 = arith.constant 1 : index
    %c0_22 = arith.constant 0 : index
    %c0_23 = arith.constant 0 : index
    %22 = vector.load %arg7[%c1, %c0_22, %c0_23] : memref<15x1x32xf32, #tpu.memory_space<vmem>>, vector<1x1x32xf32>
    %23 = vector.shape_cast %22 : vector<1x1x32xf32> to vector<1x32xf32>
    %cst_24 = arith.constant dense<0.000000e+00> : vector<8xf32>
    %24 = vector.multi_reduction <add>, %1, %cst_24 [1] : vector<8x32xf32> to vector<8xf32>
    %25 = vector.shape_cast %24 : vector<8xf32> to vector<8x1xf32>
    %cst_25 = arith.constant 3.200000e+01 : f32
    %26 = vector.broadcast %cst_25 : f32 to vector<8x1xf32>
    %27 = arith.divf %25, %26 : vector<8x1xf32>
    %28 = vector.broadcast %27 : vector<8x1xf32> to vector<8x32xf32>
    %29 = arith.subf %1, %28 : vector<8x32xf32>
    %30 = arith.mulf %29, %29 : vector<8x32xf32>
    %cst_26 = arith.constant dense<0.000000e+00> : vector<8xf32>
    %31 = vector.multi_reduction <add>, %30, %cst_26 [1] : vector<8x32xf32> to vector<8xf32>
    %32 = vector.shape_cast %31 : vector<8xf32> to vector<8x1xf32>
    %cst_27 = arith.constant 3.200000e+01 : f32
    %33 = vector.broadcast %cst_27 : f32 to vector<8x1xf32>
    %34 = arith.divf %32, %33 : vector<8x1xf32>
    %35 = vector.broadcast %27 : vector<8x1xf32> to vector<8x32xf32>
    %36 = arith.subf %1, %35 : vector<8x32xf32>
    %cst_28 = arith.constant 9.99999997E-7 : f32
    %37 = vector.broadcast %cst_28 : f32 to vector<8x1xf32>
    %38 = arith.addf %34, %37 : vector<8x1xf32>
    %39 = math.rsqrt %38 : vector<8x1xf32>
    %40 = vector.broadcast %39 : vector<8x1xf32> to vector<8x32xf32>
    %41 = arith.mulf %36, %40 : vector<8x32xf32>
    %42 = vector.broadcast %21 : vector<1x32xf32> to vector<8x32xf32>
    %43 = arith.mulf %41, %42 : vector<8x32xf32>
    %44 = vector.broadcast %23 : vector<1x32xf32> to vector<8x32xf32>
    %45 = arith.addf %43, %44 : vector<8x32xf32>
    %c0_29 = arith.constant 0 : index
    %c0_30 = arith.constant 0 : index
    %c0_31 = arith.constant 0 : index
    %46 = vector.load %arg7[%c0_29, %c0_30, %c0_31] : memref<15x1x32xf32, #tpu.memory_space<vmem>>, vector<1x1x32xf32>
    %47 = vector.shape_cast %46 : vector<1x1x32xf32> to vector<1x32xf32>
    %c1_32 = arith.constant 1 : index
    %c0_33 = arith.constant 0 : index
    %c0_34 = arith.constant 0 : index
    %48 = vector.load %arg7[%c1_32, %c0_33, %c0_34] : memref<15x1x32xf32, #tpu.memory_space<vmem>>, vector<1x1x32xf32>
    %49 = vector.shape_cast %48 : vector<1x1x32xf32> to vector<1x32xf32>
    %cst_35 = arith.constant dense<0.000000e+00> : vector<16xf32>
    %50 = vector.multi_reduction <add>, %3, %cst_35 [1] : vector<16x32xf32> to vector<16xf32>
    %51 = vector.shape_cast %50 : vector<16xf32> to vector<16x1xf32>
    %cst_36 = arith.constant 3.200000e+01 : f32
    %52 = vector.broadcast %cst_36 : f32 to vector<16x1xf32>
    %53 = arith.divf %51, %52 : vector<16x1xf32>
    %54 = vector.broadcast %53 : vector<16x1xf32> to vector<16x32xf32>
    %55 = arith.subf %3, %54 : vector<16x32xf32>
    %56 = arith.mulf %55, %55 : vector<16x32xf32>
    %cst_37 = arith.constant dense<0.000000e+00> : vector<16xf32>
    %57 = vector.multi_reduction <add>, %56, %cst_37 [1] : vector<16x32xf32> to vector<16xf32>
    %58 = vector.shape_cast %57 : vector<16xf32> to vector<16x1xf32>
    %cst_38 = arith.constant 3.200000e+01 : f32
    %59 = vector.broadcast %cst_38 : f32 to vector<16x1xf32>
    %60 = arith.divf %58, %59 : vector<16x1xf32>
    %61 = vector.broadcast %53 : vector<16x1xf32> to vector<16x32xf32>
    %62 = arith.subf %3, %61 : vector<16x32xf32>
    %cst_39 = arith.constant 9.99999997E-7 : f32
    %63 = vector.broadcast %cst_39 : f32 to vector<16x1xf32>
    %64 = arith.addf %60, %63 : vector<16x1xf32>
    %65 = math.rsqrt %64 : vector<16x1xf32>
    %66 = vector.broadcast %65 : vector<16x1xf32> to vector<16x32xf32>
    %67 = arith.mulf %62, %66 : vector<16x32xf32>
    %68 = vector.broadcast %47 : vector<1x32xf32> to vector<16x32xf32>
    %69 = arith.mulf %67, %68 : vector<16x32xf32>
    %70 = vector.broadcast %49 : vector<1x32xf32> to vector<16x32xf32>
    %71 = arith.addf %69, %70 : vector<16x32xf32>
    %72 = arith.truncf %45 : vector<8x32xf32> to vector<8x32xbf16>
    %c0_40 = arith.constant 0 : index
    %c0_41 = arith.constant 0 : index
    %73 = vector.load %arg9[%c0_40, %c0_41] : memref<32x32xbf16, #tpu.memory_space<vmem>>, vector<32x32xbf16>
    %cst_42 = arith.constant dense<0.000000e+00> : vector<8x32xf32>
    %74 = tpu.matmul %72, %73, %cst_42 {dimension_numbers = #tpu.dot_dimension_numbers<[1], [0], [0], [1], [0, 0, 1, 1], [], []>} : vector<8x32xbf16>, vector<32x32xbf16>, vector<8x32xf32> -> vector<8x32xf32>
    %c6 = arith.constant 6 : index
    %c0_43 = arith.constant 0 : index
    %c0_44 = arith.constant 0 : index
    %75 = vector.load %arg7[%c6, %c0_43, %c0_44] : memref<15x1x32xf32, #tpu.memory_space<vmem>>, vector<1x1x32xf32>
    %76 = vector.shape_cast %75 : vector<1x1x32xf32> to vector<1x32xf32>
    %77 = vector.broadcast %76 : vector<1x32xf32> to vector<8x32xf32>
    %78 = arith.addf %74, %77 : vector<8x32xf32>
    %79 = arith.truncf %71 : vector<16x32xf32> to vector<16x32xbf16>
    %c0_45 = arith.constant 0 : index
    %c0_46 = arith.constant 0 : index
    %80 = vector.load %arg10[%c0_45, %c0_46] : memref<32x64xbf16, #tpu.memory_space<vmem>>, vector<32x64xbf16>
    %cst_47 = arith.constant dense<0.000000e+00> : vector<16x64xf32>
    %81 = tpu.matmul %79, %80, %cst_47 {dimension_numbers = #tpu.dot_dimension_numbers<[1], [0], [0], [1], [0, 0, 1, 1], [], []>} : vector<16x32xbf16>, vector<32x64xbf16>, vector<16x64xf32> -> vector<16x64xf32>
    %82 = vector.extract_strided_slice %81 {offsets = [0, 0], sizes = [16, 32], strides = [1, 1]} : vector<16x64xf32> to vector<16x32xf32>
    %c7 = arith.constant 7 : index
    %c0_48 = arith.constant 0 : index
    %c0_49 = arith.constant 0 : index
    %83 = vector.load %arg7[%c7, %c0_48, %c0_49] : memref<15x1x32xf32, #tpu.memory_space<vmem>>, vector<1x1x32xf32>
    %84 = vector.shape_cast %83 : vector<1x1x32xf32> to vector<1x32xf32>
    %85 = vector.broadcast %84 : vector<1x32xf32> to vector<16x32xf32>
    %86 = arith.addf %82, %85 : vector<16x32xf32>
    %87 = vector.extract_strided_slice %81 {offsets = [0, 32], sizes = [16, 32], strides = [1, 1]} : vector<16x64xf32> to vector<16x32xf32>
    %c8 = arith.constant 8 : index
    %c0_50 = arith.constant 0 : index
    %c0_51 = arith.constant 0 : index
    %88 = vector.load %arg7[%c8, %c0_50, %c0_51] : memref<15x1x32xf32, #tpu.memory_space<vmem>>, vector<1x1x32xf32>
    %89 = vector.shape_cast %88 : vector<1x1x32xf32> to vector<1x32xf32>
    %90 = vector.broadcast %89 : vector<1x32xf32> to vector<16x32xf32>
    %91 = arith.addf %87, %90 : vector<16x32xf32>
    %92 = vector.extract_strided_slice %78 {offsets = [0, 0], sizes = [8, 8], strides = [1, 1]} : vector<8x32xf32> to vector<8x8xf32>
    %93 = vector.shape_cast %92 : vector<8x8xf32> to vector<1x8x8xf32>
    %94 = vector.extract_strided_slice %78 {offsets = [0, 8], sizes = [8, 8], strides = [1, 1]} : vector<8x32xf32> to vector<8x8xf32>
    %95 = vector.shape_cast %94 : vector<8x8xf32> to vector<1x8x8xf32>
    %96 = vector.extract_strided_slice %78 {offsets = [0, 16], sizes = [8, 8], strides = [1, 1]} : vector<8x32xf32> to vector<8x8xf32>
    %97 = vector.shape_cast %96 : vector<8x8xf32> to vector<1x8x8xf32>
    %98 = vector.extract_strided_slice %78 {offsets = [0, 24], sizes = [8, 8], strides = [1, 1]} : vector<8x32xf32> to vector<8x8xf32>
    %99 = vector.shape_cast %98 : vector<8x8xf32> to vector<1x8x8xf32>
    %100 = tpu.concatenate %93, %95, %97, %99 in 0 : vector<1x8x8xf32>, vector<1x8x8xf32>, vector<1x8x8xf32>, vector<1x8x8xf32> -> vector<4x8x8xf32>
    %cst_52 = arith.constant 0.353553385 : f32
    %101 = vector.broadcast %cst_52 : f32 to vector<4x8x8xf32>
    %102 = arith.mulf %100, %101 : vector<4x8x8xf32>
    %103 = arith.truncf %102 : vector<4x8x8xf32> to vector<4x8x8xbf16>
    %104 = vector.extract_strided_slice %86 {offsets = [0, 0], sizes = [16, 8], strides = [1, 1]} : vector<16x32xf32> to vector<16x8xf32>
    %105 = vector.shape_cast %104 : vector<16x8xf32> to vector<1x16x8xf32>
    %106 = vector.extract_strided_slice %86 {offsets = [0, 8], sizes = [16, 8], strides = [1, 1]} : vector<16x32xf32> to vector<16x8xf32>
    %107 = vector.shape_cast %106 : vector<16x8xf32> to vector<1x16x8xf32>
    %108 = vector.extract_strided_slice %86 {offsets = [0, 16], sizes = [16, 8], strides = [1, 1]} : vector<16x32xf32> to vector<16x8xf32>
    %109 = vector.shape_cast %108 : vector<16x8xf32> to vector<1x16x8xf32>
    %110 = vector.extract_strided_slice %86 {offsets = [0, 24], sizes = [16, 8], strides = [1, 1]} : vector<16x32xf32> to vector<16x8xf32>
    %111 = vector.shape_cast %110 : vector<16x8xf32> to vector<1x16x8xf32>
    %112 = tpu.concatenate %105, %107, %109, %111 in 0 : vector<1x16x8xf32>, vector<1x16x8xf32>, vector<1x16x8xf32>, vector<1x16x8xf32> -> vector<4x16x8xf32>
    %113 = arith.truncf %112 : vector<4x16x8xf32> to vector<4x16x8xbf16>
    %114 = vector.extract_strided_slice %91 {offsets = [0, 0], sizes = [16, 8], strides = [1, 1]} : vector<16x32xf32> to vector<16x8xf32>
    %115 = vector.shape_cast %114 : vector<16x8xf32> to vector<1x16x8xf32>
    %116 = vector.extract_strided_slice %91 {offsets = [0, 8], sizes = [16, 8], strides = [1, 1]} : vector<16x32xf32> to vector<16x8xf32>
    %117 = vector.shape_cast %116 : vector<16x8xf32> to vector<1x16x8xf32>
    %118 = vector.extract_strided_slice %91 {offsets = [0, 16], sizes = [16, 8], strides = [1, 1]} : vector<16x32xf32> to vector<16x8xf32>
    %119 = vector.shape_cast %118 : vector<16x8xf32> to vector<1x16x8xf32>
    %120 = vector.extract_strided_slice %91 {offsets = [0, 24], sizes = [16, 8], strides = [1, 1]} : vector<16x32xf32> to vector<16x8xf32>
    %121 = vector.shape_cast %120 : vector<16x8xf32> to vector<1x16x8xf32>
    %122 = tpu.concatenate %115, %117, %119, %121 in 0 : vector<1x16x8xf32>, vector<1x16x8xf32>, vector<1x16x8xf32>, vector<1x16x8xf32> -> vector<4x16x8xf32>
    %123 = arith.truncf %122 : vector<4x16x8xf32> to vector<4x16x8xbf16>
    "tpu.trace_start"() <{level = 10 : i32, message = "htd,hsd->hts"}> : () -> ()
    %cst_53 = arith.constant dense<0.000000e+00> : vector<4x8x16xf32>
    %124 = tpu.matmul %103, %113, %cst_53 {dimension_numbers = #tpu.dot_dimension_numbers<[2], [2], [1], [1], [0, 0, 0, 1, 1, 1], [0], [0]>} : vector<4x8x8xbf16>, vector<4x16x8xbf16>, vector<4x8x16xf32> -> vector<4x8x16xf32>
    "tpu.trace_stop"() : () -> ()
    %125 = vector.shape_cast %12 : vector<8x16xf32> to vector<1x8x16xf32>
    %126 = vector.broadcast %125 : vector<1x8x16xf32> to vector<4x8x16xf32>
    %127 = arith.addf %124, %126 : vector<4x8x16xf32>
    %cst_54 = arith.constant dense<0xFF800000> : vector<4x8xf32>
    %128 = vector.multi_reduction <maximumf>, %127, %cst_54 [2] : vector<4x8x16xf32> to vector<4x8xf32>
    %129 = vector.shape_cast %128 : vector<4x8xf32> to vector<4x8x1xf32>
    %130 = vector.broadcast %129 : vector<4x8x1xf32> to vector<4x8x16xf32>
    %131 = arith.subf %127, %130 : vector<4x8x16xf32>
    %132 = math.exp %131 : vector<4x8x16xf32>
    %cst_55 = arith.constant dense<0.000000e+00> : vector<4x8xf32>
    %133 = vector.multi_reduction <add>, %132, %cst_55 [2] : vector<4x8x16xf32> to vector<4x8xf32>
    %134 = vector.shape_cast %133 : vector<4x8xf32> to vector<4x8x1xf32>
    %135 = tpu.reciprocal %134 {approx = true} : vector<4x8x1xf32> -> vector<4x8x1xf32>
    %136 = vector.broadcast %135 : vector<4x8x1xf32> to vector<4x8x16xf32>
    %137 = arith.mulf %132, %136 : vector<4x8x16xf32>
    %138 = arith.truncf %137 : vector<4x8x16xf32> to vector<4x8x16xbf16>
    "tpu.trace_start"() <{level = 10 : i32, message = "hts,hsd->htd"}> : () -> ()
    %cst_56 = arith.constant dense<0.000000e+00> : vector<4x8x8xf32>
    %139 = tpu.matmul %138, %123, %cst_56 {dimension_numbers = #tpu.dot_dimension_numbers<[2], [1], [1], [2], [0, 0, 0, 1, 1, 2], [0], [0]>} : vector<4x8x16xbf16>, vector<4x16x8xbf16>, vector<4x8x8xf32> -> vector<4x8x8xf32>
    "tpu.trace_stop"() : () -> ()
    %140 = vector.extract_strided_slice %139 {offsets = [0, 0, 0], sizes = [1, 8, 8], strides = [1, 1, 1]} : vector<4x8x8xf32> to vector<1x8x8xf32>
    %141 = vector.shape_cast %140 : vector<1x8x8xf32> to vector<8x8xf32>
    %142 = vector.extract_strided_slice %139 {offsets = [1, 0, 0], sizes = [1, 8, 8], strides = [1, 1, 1]} : vector<4x8x8xf32> to vector<1x8x8xf32>
    %143 = vector.shape_cast %142 : vector<1x8x8xf32> to vector<8x8xf32>
    %144 = vector.extract_strided_slice %139 {offsets = [2, 0, 0], sizes = [1, 8, 8], strides = [1, 1, 1]} : vector<4x8x8xf32> to vector<1x8x8xf32>
    %145 = vector.shape_cast %144 : vector<1x8x8xf32> to vector<8x8xf32>
    %146 = vector.extract_strided_slice %139 {offsets = [3, 0, 0], sizes = [1, 8, 8], strides = [1, 1, 1]} : vector<4x8x8xf32> to vector<1x8x8xf32>
    %147 = vector.shape_cast %146 : vector<1x8x8xf32> to vector<8x8xf32>
    %148 = tpu.concatenate %141, %143, %145, %147 in 1 : vector<8x8xf32>, vector<8x8xf32>, vector<8x8xf32>, vector<8x8xf32> -> vector<8x32xf32>
    %149 = arith.truncf %148 : vector<8x32xf32> to vector<8x32xbf16>
    %c0_57 = arith.constant 0 : index
    %c0_58 = arith.constant 0 : index
    %150 = vector.load %arg11[%c0_57, %c0_58] : memref<32x32xbf16, #tpu.memory_space<vmem>>, vector<32x32xbf16>
    %cst_59 = arith.constant dense<0.000000e+00> : vector<8x32xf32>
    %151 = tpu.matmul %149, %150, %cst_59 {dimension_numbers = #tpu.dot_dimension_numbers<[1], [0], [0], [1], [0, 0, 1, 1], [], []>} : vector<8x32xbf16>, vector<32x32xbf16>, vector<8x32xf32> -> vector<8x32xf32>
    %c9 = arith.constant 9 : index
    %c0_60 = arith.constant 0 : index
    %c0_61 = arith.constant 0 : index
    %152 = vector.load %arg7[%c9, %c0_60, %c0_61] : memref<15x1x32xf32, #tpu.memory_space<vmem>>, vector<1x1x32xf32>
    %153 = vector.shape_cast %152 : vector<1x1x32xf32> to vector<1x32xf32>
    %154 = vector.broadcast %153 : vector<1x32xf32> to vector<8x32xf32>
    %155 = arith.addf %151, %154 : vector<8x32xf32>
    %156 = arith.addf %155, %1 : vector<8x32xf32>
    %c2 = arith.constant 2 : index
    %c0_62 = arith.constant 0 : index
    %c0_63 = arith.constant 0 : index
    %157 = vector.load %arg7[%c2, %c0_62, %c0_63] : memref<15x1x32xf32, #tpu.memory_space<vmem>>, vector<1x1x32xf32>
    %158 = vector.shape_cast %157 : vector<1x1x32xf32> to vector<1x32xf32>
    %c3 = arith.constant 3 : index
    %c0_64 = arith.constant 0 : index
    %c0_65 = arith.constant 0 : index
    %159 = vector.load %arg7[%c3, %c0_64, %c0_65] : memref<15x1x32xf32, #tpu.memory_space<vmem>>, vector<1x1x32xf32>
    %160 = vector.shape_cast %159 : vector<1x1x32xf32> to vector<1x32xf32>
    %cst_66 = arith.constant dense<0.000000e+00> : vector<8xf32>
    %161 = vector.multi_reduction <add>, %156, %cst_66 [1] : vector<8x32xf32> to vector<8xf32>
    %162 = vector.shape_cast %161 : vector<8xf32> to vector<8x1xf32>
    %cst_67 = arith.constant 3.200000e+01 : f32
    %163 = vector.broadcast %cst_67 : f32 to vector<8x1xf32>
    %164 = arith.divf %162, %163 : vector<8x1xf32>
    %165 = vector.broadcast %164 : vector<8x1xf32> to vector<8x32xf32>
    %166 = arith.subf %156, %165 : vector<8x32xf32>
    %167 = arith.mulf %166, %166 : vector<8x32xf32>
    %cst_68 = arith.constant dense<0.000000e+00> : vector<8xf32>
    %168 = vector.multi_reduction <add>, %167, %cst_68 [1] : vector<8x32xf32> to vector<8xf32>
    %169 = vector.shape_cast %168 : vector<8xf32> to vector<8x1xf32>
    %cst_69 = arith.constant 3.200000e+01 : f32
    %170 = vector.broadcast %cst_69 : f32 to vector<8x1xf32>
    %171 = arith.divf %169, %170 : vector<8x1xf32>
    %172 = vector.broadcast %164 : vector<8x1xf32> to vector<8x32xf32>
    %173 = arith.subf %156, %172 : vector<8x32xf32>
    %cst_70 = arith.constant 9.99999997E-7 : f32
    %174 = vector.broadcast %cst_70 : f32 to vector<8x1xf32>
    %175 = arith.addf %171, %174 : vector<8x1xf32>
    %176 = math.rsqrt %175 : vector<8x1xf32>
    %177 = vector.broadcast %176 : vector<8x1xf32> to vector<8x32xf32>
    %178 = arith.mulf %173, %177 : vector<8x32xf32>
    %179 = vector.broadcast %158 : vector<1x32xf32> to vector<8x32xf32>
    %180 = arith.mulf %178, %179 : vector<8x32xf32>
    %181 = vector.broadcast %160 : vector<1x32xf32> to vector<8x32xf32>
    %182 = arith.addf %180, %181 : vector<8x32xf32>
    %183 = arith.truncf %182 : vector<8x32xf32> to vector<8x32xbf16>
    %c0_71 = arith.constant 0 : index
    %c0_72 = arith.constant 0 : index
    %184 = vector.load %arg12[%c0_71, %c0_72] : memref<32x32xbf16, #tpu.memory_space<vmem>>, vector<32x32xbf16>
    %cst_73 = arith.constant dense<0.000000e+00> : vector<8x32xf32>
    %185 = tpu.matmul %183, %184, %cst_73 {dimension_numbers = #tpu.dot_dimension_numbers<[1], [0], [0], [1], [0, 0, 1, 1], [], []>} : vector<8x32xbf16>, vector<32x32xbf16>, vector<8x32xf32> -> vector<8x32xf32>
    %c10 = arith.constant 10 : index
    %c0_74 = arith.constant 0 : index
    %c0_75 = arith.constant 0 : index
    %186 = vector.load %arg7[%c10, %c0_74, %c0_75] : memref<15x1x32xf32, #tpu.memory_space<vmem>>, vector<1x1x32xf32>
    %187 = vector.shape_cast %186 : vector<1x1x32xf32> to vector<1x32xf32>
    %188 = vector.broadcast %187 : vector<1x32xf32> to vector<8x32xf32>
    %189 = arith.addf %185, %188 : vector<8x32xf32>
    %190 = arith.truncf %5 : vector<8x32xf32> to vector<8x32xbf16>
    %c0_76 = arith.constant 0 : index
    %c0_77 = arith.constant 0 : index
    %191 = vector.load %arg13[%c0_76, %c0_77] : memref<32x64xbf16, #tpu.memory_space<vmem>>, vector<32x64xbf16>
    %cst_78 = arith.constant dense<0.000000e+00> : vector<8x64xf32>
    %192 = tpu.matmul %190, %191, %cst_78 {dimension_numbers = #tpu.dot_dimension_numbers<[1], [0], [0], [1], [0, 0, 1, 1], [], []>} : vector<8x32xbf16>, vector<32x64xbf16>, vector<8x64xf32> -> vector<8x64xf32>
    %193 = vector.extract_strided_slice %192 {offsets = [0, 0], sizes = [8, 32], strides = [1, 1]} : vector<8x64xf32> to vector<8x32xf32>
    %c11 = arith.constant 11 : index
    %c0_79 = arith.constant 0 : index
    %c0_80 = arith.constant 0 : index
    %194 = vector.load %arg7[%c11, %c0_79, %c0_80] : memref<15x1x32xf32, #tpu.memory_space<vmem>>, vector<1x1x32xf32>
    %195 = vector.shape_cast %194 : vector<1x1x32xf32> to vector<1x32xf32>
    %196 = vector.broadcast %195 : vector<1x32xf32> to vector<8x32xf32>
    %197 = arith.addf %193, %196 : vector<8x32xf32>
    %198 = vector.extract_strided_slice %192 {offsets = [0, 32], sizes = [8, 32], strides = [1, 1]} : vector<8x64xf32> to vector<8x32xf32>
    %c12 = arith.constant 12 : index
    %c0_81 = arith.constant 0 : index
    %c0_82 = arith.constant 0 : index
    %199 = vector.load %arg7[%c12, %c0_81, %c0_82] : memref<15x1x32xf32, #tpu.memory_space<vmem>>, vector<1x1x32xf32>
    %200 = vector.shape_cast %199 : vector<1x1x32xf32> to vector<1x32xf32>
    %201 = vector.broadcast %200 : vector<1x32xf32> to vector<8x32xf32>
    %202 = arith.addf %198, %201 : vector<8x32xf32>
    %203 = vector.extract_strided_slice %189 {offsets = [0, 0], sizes = [8, 8], strides = [1, 1]} : vector<8x32xf32> to vector<8x8xf32>
    %204 = vector.shape_cast %203 : vector<8x8xf32> to vector<1x8x8xf32>
    %205 = vector.extract_strided_slice %189 {offsets = [0, 8], sizes = [8, 8], strides = [1, 1]} : vector<8x32xf32> to vector<8x8xf32>
    %206 = vector.shape_cast %205 : vector<8x8xf32> to vector<1x8x8xf32>
    %207 = vector.extract_strided_slice %189 {offsets = [0, 16], sizes = [8, 8], strides = [1, 1]} : vector<8x32xf32> to vector<8x8xf32>
    %208 = vector.shape_cast %207 : vector<8x8xf32> to vector<1x8x8xf32>
    %209 = vector.extract_strided_slice %189 {offsets = [0, 24], sizes = [8, 8], strides = [1, 1]} : vector<8x32xf32> to vector<8x8xf32>
    %210 = vector.shape_cast %209 : vector<8x8xf32> to vector<1x8x8xf32>
    %211 = tpu.concatenate %204, %206, %208, %210 in 0 : vector<1x8x8xf32>, vector<1x8x8xf32>, vector<1x8x8xf32>, vector<1x8x8xf32> -> vector<4x8x8xf32>
    %cst_83 = arith.constant 0.353553385 : f32
    %212 = vector.broadcast %cst_83 : f32 to vector<4x8x8xf32>
    %213 = arith.mulf %211, %212 : vector<4x8x8xf32>
    %214 = arith.truncf %213 : vector<4x8x8xf32> to vector<4x8x8xbf16>
    %215 = vector.extract_strided_slice %197 {offsets = [0, 0], sizes = [8, 8], strides = [1, 1]} : vector<8x32xf32> to vector<8x8xf32>
    %216 = vector.shape_cast %215 : vector<8x8xf32> to vector<1x8x8xf32>
    %217 = vector.extract_strided_slice %197 {offsets = [0, 8], sizes = [8, 8], strides = [1, 1]} : vector<8x32xf32> to vector<8x8xf32>
    %218 = vector.shape_cast %217 : vector<8x8xf32> to vector<1x8x8xf32>
    %219 = vector.extract_strided_slice %197 {offsets = [0, 16], sizes = [8, 8], strides = [1, 1]} : vector<8x32xf32> to vector<8x8xf32>
    %220 = vector.shape_cast %219 : vector<8x8xf32> to vector<1x8x8xf32>
    %221 = vector.extract_strided_slice %197 {offsets = [0, 24], sizes = [8, 8], strides = [1, 1]} : vector<8x32xf32> to vector<8x8xf32>
    %222 = vector.shape_cast %221 : vector<8x8xf32> to vector<1x8x8xf32>
    %223 = tpu.concatenate %216, %218, %220, %222 in 0 : vector<1x8x8xf32>, vector<1x8x8xf32>, vector<1x8x8xf32>, vector<1x8x8xf32> -> vector<4x8x8xf32>
    %224 = arith.truncf %223 : vector<4x8x8xf32> to vector<4x8x8xbf16>
    %225 = vector.extract_strided_slice %202 {offsets = [0, 0], sizes = [8, 8], strides = [1, 1]} : vector<8x32xf32> to vector<8x8xf32>
    %226 = vector.shape_cast %225 : vector<8x8xf32> to vector<1x8x8xf32>
    %227 = vector.extract_strided_slice %202 {offsets = [0, 8], sizes = [8, 8], strides = [1, 1]} : vector<8x32xf32> to vector<8x8xf32>
    %228 = vector.shape_cast %227 : vector<8x8xf32> to vector<1x8x8xf32>
    %229 = vector.extract_strided_slice %202 {offsets = [0, 16], sizes = [8, 8], strides = [1, 1]} : vector<8x32xf32> to vector<8x8xf32>
    %230 = vector.shape_cast %229 : vector<8x8xf32> to vector<1x8x8xf32>
    %231 = vector.extract_strided_slice %202 {offsets = [0, 24], sizes = [8, 8], strides = [1, 1]} : vector<8x32xf32> to vector<8x8xf32>
    %232 = vector.shape_cast %231 : vector<8x8xf32> to vector<1x8x8xf32>
    %233 = tpu.concatenate %226, %228, %230, %232 in 0 : vector<1x8x8xf32>, vector<1x8x8xf32>, vector<1x8x8xf32>, vector<1x8x8xf32> -> vector<4x8x8xf32>
    %234 = arith.truncf %233 : vector<4x8x8xf32> to vector<4x8x8xbf16>
    "tpu.trace_start"() <{level = 10 : i32, message = "htd,hsd->hts"}> : () -> ()
    %cst_84 = arith.constant dense<0.000000e+00> : vector<4x8x8xf32>
    %235 = tpu.matmul %214, %224, %cst_84 {dimension_numbers = #tpu.dot_dimension_numbers<[2], [2], [1], [1], [0, 0, 0, 1, 1, 1], [0], [0]>} : vector<4x8x8xbf16>, vector<4x8x8xbf16>, vector<4x8x8xf32> -> vector<4x8x8xf32>
    "tpu.trace_stop"() : () -> ()
    %236 = vector.shape_cast %19 : vector<1x8xf32> to vector<1x1x8xf32>
    %237 = vector.broadcast %236 : vector<1x1x8xf32> to vector<4x8x8xf32>
    %238 = arith.addf %235, %237 : vector<4x8x8xf32>
    %cst_85 = arith.constant dense<0xFF800000> : vector<4x8xf32>
    %239 = vector.multi_reduction <maximumf>, %238, %cst_85 [2] : vector<4x8x8xf32> to vector<4x8xf32>
    %240 = vector.shape_cast %239 : vector<4x8xf32> to vector<4x8x1xf32>
    %241 = vector.broadcast %240 : vector<4x8x1xf32> to vector<4x8x8xf32>
    %242 = arith.subf %238, %241 : vector<4x8x8xf32>
    %243 = math.exp %242 : vector<4x8x8xf32>
    %cst_86 = arith.constant dense<0.000000e+00> : vector<4x8xf32>
    %244 = vector.multi_reduction <add>, %243, %cst_86 [2] : vector<4x8x8xf32> to vector<4x8xf32>
    %245 = vector.shape_cast %244 : vector<4x8xf32> to vector<4x8x1xf32>
    %246 = tpu.reciprocal %245 {approx = true} : vector<4x8x1xf32> -> vector<4x8x1xf32>
    %247 = vector.broadcast %246 : vector<4x8x1xf32> to vector<4x8x8xf32>
    %248 = arith.mulf %243, %247 : vector<4x8x8xf32>
    %249 = arith.truncf %248 : vector<4x8x8xf32> to vector<4x8x8xbf16>
    "tpu.trace_start"() <{level = 10 : i32, message = "hts,hsd->htd"}> : () -> ()
    %cst_87 = arith.constant dense<0.000000e+00> : vector<4x8x8xf32>
    %250 = tpu.matmul %249, %234, %cst_87 {dimension_numbers = #tpu.dot_dimension_numbers<[2], [1], [1], [2], [0, 0, 0, 1, 1, 2], [0], [0]>} : vector<4x8x8xbf16>, vector<4x8x8xbf16>, vector<4x8x8xf32> -> vector<4x8x8xf32>
    "tpu.trace_stop"() : () -> ()
    %251 = vector.extract_strided_slice %250 {offsets = [0, 0, 0], sizes = [1, 8, 8], strides = [1, 1, 1]} : vector<4x8x8xf32> to vector<1x8x8xf32>
    %252 = vector.shape_cast %251 : vector<1x8x8xf32> to vector<8x8xf32>
    %253 = vector.extract_strided_slice %250 {offsets = [1, 0, 0], sizes = [1, 8, 8], strides = [1, 1, 1]} : vector<4x8x8xf32> to vector<1x8x8xf32>
    %254 = vector.shape_cast %253 : vector<1x8x8xf32> to vector<8x8xf32>
    %255 = vector.extract_strided_slice %250 {offsets = [2, 0, 0], sizes = [1, 8, 8], strides = [1, 1, 1]} : vector<4x8x8xf32> to vector<1x8x8xf32>
    %256 = vector.shape_cast %255 : vector<1x8x8xf32> to vector<8x8xf32>
    %257 = vector.extract_strided_slice %250 {offsets = [3, 0, 0], sizes = [1, 8, 8], strides = [1, 1, 1]} : vector<4x8x8xf32> to vector<1x8x8xf32>
    %258 = vector.shape_cast %257 : vector<1x8x8xf32> to vector<8x8xf32>
    %259 = tpu.concatenate %252, %254, %256, %258 in 1 : vector<8x8xf32>, vector<8x8xf32>, vector<8x8xf32>, vector<8x8xf32> -> vector<8x32xf32>
    %260 = arith.truncf %259 : vector<8x32xf32> to vector<8x32xbf16>
    %c0_88 = arith.constant 0 : index
    %c0_89 = arith.constant 0 : index
    %261 = vector.load %arg14[%c0_88, %c0_89] : memref<32x32xbf16, #tpu.memory_space<vmem>>, vector<32x32xbf16>
    %cst_90 = arith.constant dense<0.000000e+00> : vector<8x32xf32>
    %262 = tpu.matmul %260, %261, %cst_90 {dimension_numbers = #tpu.dot_dimension_numbers<[1], [0], [0], [1], [0, 0, 1, 1], [], []>} : vector<8x32xbf16>, vector<32x32xbf16>, vector<8x32xf32> -> vector<8x32xf32>
    %c13 = arith.constant 13 : index
    %c0_91 = arith.constant 0 : index
    %c0_92 = arith.constant 0 : index
    %263 = vector.load %arg7[%c13, %c0_91, %c0_92] : memref<15x1x32xf32, #tpu.memory_space<vmem>>, vector<1x1x32xf32>
    %264 = vector.shape_cast %263 : vector<1x1x32xf32> to vector<1x32xf32>
    %265 = vector.broadcast %264 : vector<1x32xf32> to vector<8x32xf32>
    %266 = arith.addf %262, %265 : vector<8x32xf32>
    %267 = arith.addf %266, %156 : vector<8x32xf32>
    %c4 = arith.constant 4 : index
    %c0_93 = arith.constant 0 : index
    %c0_94 = arith.constant 0 : index
    %268 = vector.load %arg7[%c4, %c0_93, %c0_94] : memref<15x1x32xf32, #tpu.memory_space<vmem>>, vector<1x1x32xf32>
    %269 = vector.shape_cast %268 : vector<1x1x32xf32> to vector<1x32xf32>
    %c5 = arith.constant 5 : index
    %c0_95 = arith.constant 0 : index
    %c0_96 = arith.constant 0 : index
    %270 = vector.load %arg7[%c5, %c0_95, %c0_96] : memref<15x1x32xf32, #tpu.memory_space<vmem>>, vector<1x1x32xf32>
    %271 = vector.shape_cast %270 : vector<1x1x32xf32> to vector<1x32xf32>
    %cst_97 = arith.constant dense<0.000000e+00> : vector<8xf32>
    %272 = vector.multi_reduction <add>, %267, %cst_97 [1] : vector<8x32xf32> to vector<8xf32>
    %273 = vector.shape_cast %272 : vector<8xf32> to vector<8x1xf32>
    %cst_98 = arith.constant 3.200000e+01 : f32
    %274 = vector.broadcast %cst_98 : f32 to vector<8x1xf32>
    %275 = arith.divf %273, %274 : vector<8x1xf32>
    %276 = vector.broadcast %275 : vector<8x1xf32> to vector<8x32xf32>
    %277 = arith.subf %267, %276 : vector<8x32xf32>
    %278 = arith.mulf %277, %277 : vector<8x32xf32>
    %cst_99 = arith.constant dense<0.000000e+00> : vector<8xf32>
    %279 = vector.multi_reduction <add>, %278, %cst_99 [1] : vector<8x32xf32> to vector<8xf32>
    %280 = vector.shape_cast %279 : vector<8xf32> to vector<8x1xf32>
    %cst_100 = arith.constant 3.200000e+01 : f32
    %281 = vector.broadcast %cst_100 : f32 to vector<8x1xf32>
    %282 = arith.divf %280, %281 : vector<8x1xf32>
    %283 = vector.broadcast %275 : vector<8x1xf32> to vector<8x32xf32>
    %284 = arith.subf %267, %283 : vector<8x32xf32>
    %cst_101 = arith.constant 9.99999997E-7 : f32
    %285 = vector.broadcast %cst_101 : f32 to vector<8x1xf32>
    %286 = arith.addf %282, %285 : vector<8x1xf32>
    %287 = math.rsqrt %286 : vector<8x1xf32>
    %288 = vector.broadcast %287 : vector<8x1xf32> to vector<8x32xf32>
    %289 = arith.mulf %284, %288 : vector<8x32xf32>
    %290 = vector.broadcast %269 : vector<1x32xf32> to vector<8x32xf32>
    %291 = arith.mulf %289, %290 : vector<8x32xf32>
    %292 = vector.broadcast %271 : vector<1x32xf32> to vector<8x32xf32>
    %293 = arith.addf %291, %292 : vector<8x32xf32>
    %294 = arith.truncf %293 : vector<8x32xf32> to vector<8x32xbf16>
    %c0_102 = arith.constant 0 : index
    %c0_103 = arith.constant 0 : index
    %295 = vector.load %arg15[%c0_102, %c0_103] : memref<32x64xbf16, #tpu.memory_space<vmem>>, vector<32x64xbf16>
    %cst_104 = arith.constant dense<0.000000e+00> : vector<8x64xf32>
    %296 = tpu.matmul %294, %295, %cst_104 {dimension_numbers = #tpu.dot_dimension_numbers<[1], [0], [0], [1], [0, 0, 1, 1], [], []>} : vector<8x32xbf16>, vector<32x64xbf16>, vector<8x64xf32> -> vector<8x64xf32>
    %c0_105 = arith.constant 0 : index
    %c0_106 = arith.constant 0 : index
    %297 = vector.load %arg8[%c0_105, %c0_106] : memref<1x64xf32, #tpu.memory_space<vmem>>, vector<1x64xf32>
    %298 = vector.broadcast %297 : vector<1x64xf32> to vector<8x64xf32>
    %299 = arith.addf %296, %298 : vector<8x64xf32>
    %cst_107 = arith.constant 0.000000e+00 : f32
    %300 = vector.broadcast %cst_107 : f32 to vector<8x64xf32>
    %301 = arith.maximumf %299, %300 : vector<8x64xf32>
    %302 = arith.truncf %301 : vector<8x64xf32> to vector<8x64xbf16>
    %c0_108 = arith.constant 0 : index
    %c0_109 = arith.constant 0 : index
    %303 = vector.load %arg16[%c0_108, %c0_109] : memref<64x32xbf16, #tpu.memory_space<vmem>>, vector<64x32xbf16>
    %cst_110 = arith.constant dense<0.000000e+00> : vector<8x32xf32>
    %304 = tpu.matmul %302, %303, %cst_110 {dimension_numbers = #tpu.dot_dimension_numbers<[1], [0], [0], [1], [0, 0, 1, 1], [], []>} : vector<8x64xbf16>, vector<64x32xbf16>, vector<8x32xf32> -> vector<8x32xf32>
    %c14 = arith.constant 14 : index
    %c0_111 = arith.constant 0 : index
    %c0_112 = arith.constant 0 : index
    %305 = vector.load %arg7[%c14, %c0_111, %c0_112] : memref<15x1x32xf32, #tpu.memory_space<vmem>>, vector<1x1x32xf32>
    %306 = vector.shape_cast %305 : vector<1x1x32xf32> to vector<1x32xf32>
    %307 = vector.broadcast %306 : vector<1x32xf32> to vector<8x32xf32>
    %308 = arith.addf %304, %307 : vector<8x32xf32>
    %309 = arith.addf %308, %267 : vector<8x32xf32>
    %c0_113 = arith.constant 0 : index
    %c0_114 = arith.constant 0 : index
    %c0_115 = arith.constant 0 : index
    %310 = vector.load %arg17[%c0_113, %c0_114, %c0_115] : memref<1x8x32xf32, #tpu.memory_space<vmem>>, vector<1x8x32xf32>
    %311 = vector.shape_cast %310 : vector<1x8x32xf32> to vector<8x32xf32>
    %312 = vector.shape_cast %309 : vector<8x32xf32> to vector<1x8x32xf32>
    tpu.vector_store %arg17[%c0_113, %c0_114, %c0_115], %312 {strides = array<i32>} : memref<1x8x32xf32, #tpu.memory_space<vmem>>, vector<1x8x32xf32>,
    return
  }
  func.func @transform_0(%arg0: i32, %arg1: i32) -> (i32, i32, i32) {
    %c0_i32 = arith.constant 0 : i32
    %c0_i32_0 = arith.constant 0 : i32
    return %arg0, %arg1, %c0_i32 : i32, i32, i32
  }
  func.func @transform_1(%arg0: i32, %arg1: i32) -> (i32, i32, i32) {
    %c0_i32 = arith.constant 0 : i32
    %c0_i32_0 = arith.constant 0 : i32
    %c0_i32_1 = arith.constant 0 : i32
    return %arg0, %c0_i32, %c0_i32_0 : i32, i32, i32
  }
  func.func @transform_2(%arg0: i32, %arg1: i32) -> (i32, i32, i32) {
    %c0_i32 = arith.constant 0 : i32
    %c0_i32_0 = arith.constant 0 : i32
    %c0_i32_1 = arith.constant 0 : i32
    return %arg0, %c0_i32, %c0_i32_0 : i32, i32, i32
  }
  func.func @transform_3(%arg0: i32, %arg1: i32) -> (i32, i32, i32) {
    %c0_i32 = arith.constant 0 : i32
    %c0_i32_0 = arith.constant 0 : i32
    return %arg0, %arg1, %c0_i32 : i32, i32, i32
  }
  func.func @transform_4(%arg0: i32, %arg1: i32) -> (i32, i32, i32) {
    %c0_i32 = arith.constant 0 : i32
    %c0_i32_0 = arith.constant 0 : i32
    %c0_i32_1 = arith.constant 0 : i32
    return %arg0, %c0_i32, %c0_i32_0 : i32, i32, i32
  }
  func.func @transform_5(%arg0: i32, %arg1: i32) -> (i32, i32, i32) {
    %c0_i32 = arith.constant 0 : i32
    %c0_i32_0 = arith.constant 0 : i32
    %c0_i32_1 = arith.constant 0 : i32
    %c0_i32_2 = arith.constant 0 : i32
    return %c0_i32, %c0_i32_0, %c0_i32_1 : i32, i32, i32
  }
  func.func @transform_6(%arg0: i32, %arg1: i32) -> (i32, i32) {
    %c0_i32 = arith.constant 0 : i32
    %c0_i32_0 = arith.constant 0 : i32
    %c0_i32_1 = arith.constant 0 : i32
    return %c0_i32, %c0_i32_0 : i32, i32
  }
  func.func @transform_7(%arg0: i32, %arg1: i32) -> (i32, i32) {
    %c0_i32 = arith.constant 0 : i32
    %c0_i32_0 = arith.constant 0 : i32
    %c0_i32_1 = arith.constant 0 : i32
    return %c0_i32, %c0_i32_0 : i32, i32
  }
  func.func @transform_8(%arg0: i32, %arg1: i32) -> (i32, i32) {
    %c0_i32 = arith.constant 0 : i32
    %c0_i32_0 = arith.constant 0 : i32
    %c0_i32_1 = arith.constant 0 : i32
    return %c0_i32, %c0_i32_0 : i32, i32
  }
  func.func @transform_9(%arg0: i32, %arg1: i32) -> (i32, i32) {
    %c0_i32 = arith.constant 0 : i32
    %c0_i32_0 = arith.constant 0 : i32
    %c0_i32_1 = arith.constant 0 : i32
    return %c0_i32, %c0_i32_0 : i32, i32
  }
  func.func @transform_10(%arg0: i32, %arg1: i32) -> (i32, i32) {
    %c0_i32 = arith.constant 0 : i32
    %c0_i32_0 = arith.constant 0 : i32
    %c0_i32_1 = arith.constant 0 : i32
    return %c0_i32, %c0_i32_0 : i32, i32
  }
  func.func @transform_11(%arg0: i32, %arg1: i32) -> (i32, i32) {
    %c0_i32 = arith.constant 0 : i32
    %c0_i32_0 = arith.constant 0 : i32
    %c0_i32_1 = arith.constant 0 : i32
    return %c0_i32, %c0_i32_0 : i32, i32
  }
  func.func @transform_12(%arg0: i32, %arg1: i32) -> (i32, i32) {
    %c0_i32 = arith.constant 0 : i32
    %c0_i32_0 = arith.constant 0 : i32
    %c0_i32_1 = arith.constant 0 : i32
    return %c0_i32, %c0_i32_0 : i32, i32
  }
  func.func @transform_13(%arg0: i32, %arg1: i32) -> (i32, i32) {
    %c0_i32 = arith.constant 0 : i32
    %c0_i32_0 = arith.constant 0 : i32
    %c0_i32_1 = arith.constant 0 : i32
    return %c0_i32, %c0_i32_0 : i32, i32
  }
  func.func @transform_14(%arg0: i32, %arg1: i32) -> (i32, i32) {
    %c0_i32 = arith.constant 0 : i32
    %c0_i32_0 = arith.constant 0 : i32
    %c0_i32_1 = arith.constant 0 : i32
    return %c0_i32, %c0_i32_0 : i32, i32
  }
  func.func @transform_15(%arg0: i32, %arg1: i32) -> (i32, i32, i32) {
    %c0_i32 = arith.constant 0 : i32
    %c0_i32_0 = arith.constant 0 : i32
    return %arg0, %arg1, %c0_i32 : i32, i32, i32
  }
}

</mosaic_0001>

<bundles_post_ra>
// kernel: tpu_custom_call.1
= control target key start
LH: loop header
LB: loop body
LE: loop exit
PB: predicated region body
PF: predicated region fallthrough
CT: control target
= control target key end

     0   :  { %s3634_s0 = inlined_call_operand.vmem [shape: f32[2,16,32], index: 0, kind: input, shape index: {}]   ;;  %s3635_s1 = inlined_call_operand.hbm [shape: f32[2,16,32], index: 1, kind: input, shape index: {}]   ;;  %s3636_s2 = inlined_call_operand.vmem [shape: f32[2,8,32], index: 2, kind: input, shape index: {}]   ;;  %s3637_s3 = inlined_call_operand.hbm [shape: f32[2,16,16], index: 3, kind: input, shape index: {}]   ;;  %s3638_s4 = inlined_call_operand.vmem [shape: f32[2,1,8], index: 4, kind: input, shape index: {}]   ;;  %s3639_s5 = inlined_call_operand.hbm [shape: f32[15,1,32], index: 5, kind: input, shape index: {}]   ;;  %s3640_s6 = inlined_call_operand.vmem [shape: f32[1,64], index: 6, kind: input, shape index: {}]   ;;  %s3641_s7 = inlined_call_operand.hbm [shape: bf16[32,32], index: 7, kind: input, shape index: {}]   ;;  %s3642_s8 = inlined_call_operand.hbm [shape: bf16[32,64], index: 8, kind: input, shape index: {}]   ;;  %s3643_s9 = inlined_call_operand.hbm [shape: bf16[32,32], index: 9, kind: input, shape index: {}]   ;;  %s3644_s10 = inlined_call_operand.hbm [shape: bf16[32,32], index: 10, kind: input, shape index: {}]   ;;  %s3645_s11 = inlined_call_operand.hbm [shape: bf16[32,64], index: 11, kind: input, shape index: {}]   ;;  %s3646_s12 = inlined_call_operand.hbm [shape: bf16[32,32], index: 12, kind: input, shape index: {}]   ;;  %s3647_s13 = inlined_call_operand.hbm [shape: bf16[32,64], index: 13, kind: input, shape index: {}]   ;;  %s3648_s14 = inlined_call_operand.vmem [shape: bf16[64,32], index: 14, kind: input, shape index: {}]   ;;  %s3649_s15 = inlined_call_operand.hbm [shape: f32[2,16,32], index: 15, kind: output, shape index: {}]  }
   0x1   :  { %3661 = sst [smem:[#allocation36_spill]] %s3634_s0 }
   0x2   :  { %3662 = sst [smem:[#allocation37_spill]] %s3635_s1 }
   0x3   :  { %3663 = sst [smem:[#allocation38_spill]] %s3636_s2 }
   0x4   :  { %3664 = sst [smem:[#allocation39_spill]] %s3637_s3 }
   0x5   :  { %3665 = sst [smem:[#allocation40_spill]] %s3638_s4 }
   0x6   :  { %3666 = sst [smem:[#allocation41_spill]] %s3639_s5 }
   0x7   :  { %3667 = sst [smem:[#allocation42_spill]] %s3640_s6 }
   0x8   :  { %3668 = sst [smem:[#allocation43_spill]] %s3641_s7 }
   0x9   :  { %3669 = sst [smem:[#allocation44_spill]] %s3642_s8 }
   0xa   :  { %3670 = sst [smem:[#allocation45_spill]] %s3643_s9 }
   0xb   :  { %3671 = sst [smem:[#allocation46_spill]] %s3644_s10 }
   0xc   :  { %3672 = sst [smem:[#allocation47_spill]] %s3645_s11 }
   0xd   :  { %3673 = sst [smem:[#allocation48_spill]] %s3646_s12 }
   0xe   :  { %3674 = sst [smem:[#allocation49_spill]] %s3647_s13 }
   0xf   :  { %3675 = sst [smem:[#allocation50_spill]] %s3648_s14 }
  0x10   :  { %3676 = sst [smem:[#allocation51_spill]] %s3649_s15 }
  0x11   :  { %20 = vsyncpa [#allocation3], 0 }
  0x12   :  { %22 = vsyncpa [#allocation3 + $0x1], 0 }
  0x13   :  { %23 = vsyncpa [#allocation6], 0 }
  0x14   :  { %25 = vsyncpa [#allocation6 + $0x1], 0 }
  0x15   :  { %26 = vsyncpa [#allocation9], 0 }
  0x16   :  { %27 = vsyncpa [#allocation12], 0 }
  0x17   :  { %28 = vsyncpa [#allocation15], 0 }
  0x18   :  { %29 = vsyncpa [#allocation18], 0 }
  0x19   :  { %30 = vsyncpa [#allocation4], 0 }
  0x1a   :  { %32 = vsyncpa [#allocation4 + $0x1], 0  ;;  %s3137_s18 = smov 0   ;;  %s3139_s19 = smov 0  }
  0x1b   :  { %s3141_s20 = smov 0   ;;  %s3143_s21 = smov 0  }
  0x1c   :  { %s3145_s22 = smov 0   ;;  %s3147_s23 = smov 0  }
  0x1d   :  { %s3149_s24 = smov 0   ;;  %s3151_s25 = smov 0  }
  0x1e   :  { %s3153_s26 = smov 0   ;;  %s3155_s27 = smov 0  }
  0x1f   :  { %s3157_s28 = smov 0  }
  0x20 LB: > { %3677 = sst [smem:[#allocation28_spill]] %s2991_s18  ;;  %s3193_s29 = sadd.s32 4294967295, %s3031_s28   ;;  %s3031_s28 = sphi %s3157_s28, %s38_s28   ;;  %s3027_s27 = sphi %s3155_s27, %s3737_s27   ;;  %s3023_s26 = sphi %s3153_s26, %s3736_s26   ;;  %s3019_s25 = sphi %s3151_s25, %s3735_s25   ;;  %s3015_s24 = sphi %s3149_s24, %s3734_s24   ;;  %s3011_s23 = sphi %s3147_s23, %s3733_s23   ;;  %s3007_s22 = sphi %s3145_s22, %s3732_s22   ;;  %s3003_s21 = sphi %s3143_s21, %s3731_s21   ;;  %s2999_s20 = sphi %s3141_s20, %s3730_s20   ;;  %s2995_s19 = sphi %s3139_s19, %s3729_s19   ;;  %s2991_s18 = sphi %s3137_s18, %s3728_s18  }
  0x21   : > { %3678 = sst [smem:[#allocation29_spill]] %s3015_s24  ;;  %p2140_p0 = scmp.ge.s32.totalorder %s3031_s28, 1 }
  0x22   : > { %3679 = sst [smem:[#allocation30_spill]] %s3019_s25  ;;  %p3655_p1 = scmp.eq.s32.totalorder %s3193_s29, 0 }
  0x23   : > { %p427_p2 = scmp.lt.s32.totalorder %s3031_s28, 5  ;;  %s3680_s5 = sld [smem:[#allocation41_spill]] }
  0x24   : > { %s3033_s6 = smov [#allocation7]   ;;  %s3684_s7 = sld [smem:[#allocation43_spill]] }
  0x25   : > { %p3201_p3 = pnand %p2140_p0, %p427_p2  ;;  %s440_s14 = sshll.u32 %s3033_s6, 4  ;;  %s441_s14 = int_to_ptr.vmem [resolvable:$true] %s440_s14 }
  0x26   : > { %s3034_s16 = smov 16   ;;  %s3036_s24 = smov [#allocation8]  }
  0x27   : > { %s3681_s15 = scalar_select %p3201_p3, 1, 0 }
  0x28   : > { %p2329_p4 = pneg %p3201_p3  ;;  %s457_s6 = sshll.u32 %s3036_s24, 4  ;;  %s458_s6 = int_to_ptr.vmem [resolvable:$true] %s457_s6 }
  0x29   : > { %s438_s17 = sshll.u32 %s3680_s5, 4  ;;  %3682 = sst [smem:[#allocation31_spill]] %s3681_s15  ;;  %s439_s17 = int_to_ptr.hbm [resolvable:$true] %s438_s17 }
  0x2a   : > { %p3209_p5 = pnand %p2329_p4, %p3655_p1  ;;  %s455_s30 = sshll.u32 %s3684_s7, 4  ;;  %s456_s30 = int_to_ptr.hbm [resolvable:$true] %s455_s30 }
  0x2b   : > { %s3035_s5 = smov 1   ;;  %s3037_s25 = smov 64  }
  0x2c   : > { %2332 = dma.hbm_to_vmem [thread:$0]  (!%p3209_p5), %s439_s17, 240, %s441_s14, [#allocation6], %s3034_s16, %s3034_s16, %s3035_s5  }
  0x2d   : > { %s3038_s15 = smov 4   ;;  %s3685_s9 = sld [smem:[#allocation45_spill]] }
  0x2e   : > { %2335 = dma.hbm_to_vmem [thread:$0]  (!%p3209_p5), %s456_s30, 256, %s458_s6, [#allocation9], %s3037_s25, %s3037_s25, %s3038_s15  }
  0x2f   : > { %s3039_s3 = smov [#allocation11]   ;;  %s3686_s11 = sld [smem:[#allocation47_spill]] }
  0x30   : > { %s485_s18 = sshll.u32 %s3039_s3, 4  ;;  %s3040_s17 = smov [#allocation14]   ;;  %s486_s18 = int_to_ptr.vmem [resolvable:$true] %s485_s18 }
  0x31   : > { %s513_s30 = sshll.u32 %s3040_s17, 4  ;;  %s3687_s8 = sld [smem:[#allocation44_spill]]  ;;  %s514_s30 = int_to_ptr.vmem [resolvable:$true] %s513_s30 }
  0x32   : > { %s3688_s10 = sld [smem:[#allocation46_spill]]  ;;  %s3042_s14 = smov [#allocation13]  }
  0x33   : > { %s483_s7 = sshll.u32 %s3685_s9, 4  ;;  %s499_s17 = sshll.u32 %s3042_s14, 4  ;;  %s484_s7 = int_to_ptr.hbm [resolvable:$true] %s483_s7  ;;  %s500_s17 = int_to_ptr.vmem [resolvable:$true] %s499_s17 }
  0x34   : > { %2341 = dma.hbm_to_vmem [thread:$0]  (!%p3209_p5), %s484_s7, 256, %s486_s18, [#allocation12], %s3037_s25, %s3037_s25, %s3038_s15  }
  0x35   : > { %s511_s24 = sshll.u32 %s3686_s11, 4  ;;  %s3041_s7 = smov [#allocation10]   ;;  %s512_s24 = int_to_ptr.hbm [resolvable:$true] %s511_s24 }
  0x36   : > { %2347 = dma.hbm_to_vmem [thread:$0]  (!%p3209_p5), %s512_s24, 256, %s514_s30, [#allocation15], %s3037_s25, %s3037_s25, %s3038_s15  }
  0x37   : > { %s469_s0 = sshll.u32 %s3687_s8, 4  ;;  %s471_s18 = sshll.u32 %s3041_s7, 4  ;;  %s470_s0 = int_to_ptr.hbm [resolvable:$true] %s469_s0  ;;  %s472_s18 = int_to_ptr.vmem [resolvable:$true] %s471_s18 }
  0x38   : > { %s497_s5 = sshll.u32 %s3688_s10, 4  ;;  %s3689_s12 = sld [smem:[#allocation48_spill]]  ;;  %s498_s5 = int_to_ptr.hbm [resolvable:$true] %s497_s5 }
  0x39   : > { %2338 = dma.hbm_to_vmem [thread:$0]  (!%p3209_p5), %s470_s0, 256, %s472_s18, [#allocation9], %s3037_s25, %s3037_s25, %s3038_s15  }
  0x3a   : > { %2344 = dma.hbm_to_vmem [thread:$0]  (!%p3209_p5), %s498_s5, 256, %s500_s17, [#allocation12], %s3037_s25, %s3037_s25, %s3038_s15  }
  0x3b   : > { %s3690_s13 = sld [smem:[#allocation49_spill]]  ;;  %s3043_s2 = smov [#allocation16]  }
  0x3c   : > { %s527_s7 = sshll.u32 %s3043_s2, 4  ;;  %s3044_s18 = smov [#allocation17]   ;;  %s528_s7 = int_to_ptr.vmem [resolvable:$true] %s527_s7 }
  0x3d   : > { %s541_s14 = sshll.u32 %s3044_s18, 4  ;;  %s85_s5 = sadd.s32 1, %s3011_s23  ;;  %s542_s14 = int_to_ptr.vmem [resolvable:$true] %s541_s14 }
  0x3e   : > { %s525_s30 = sshll.u32 %s3689_s12, 4  ;;  %p92_p6 = scmp.ne.s32.totalorder %s3011_s23, %s3007_s22  ;;  %s526_s30 = int_to_ptr.hbm [resolvable:$true] %s525_s30 }
  0x3f   : > { %2350 = dma.hbm_to_vmem [thread:$0]  (!%p3209_p5), %s526_s30, 256, %s528_s7, [#allocation15], %s3037_s25, %s3037_s25, %s3038_s15  }
  0x40   : > { %p93_p7 = scmp.eq.s32.totalorder %s3031_s28, 0  ;;  %p98_p8 = scmp.ne.s32.totalorder %s3007_s22, %s3003_s21 }
  0x41   : > { %s539_s3 = sshll.u32 %s3690_s13, 4  ;;  %p2373_p9 = scmp.lt.s32.totalorder %s3031_s28, 4  ;;  %s540_s3 = int_to_ptr.hbm [resolvable:$true] %s539_s3 }
  0x42   : > { %2353 = dma.hbm_to_vmem [thread:$0]  (!%p3209_p5), %s540_s3, 256, %s542_s14, [#allocation18], %s3037_s25, %s3037_s25, %s3038_s15  }
  0x43   : > { %s569_s17 = sand.u32 1, %s3011_s23   ;;  %p94_p10 = por %p93_p7, %p92_p6 }
  0x44   : > { %p3283_p11 = por %p3655_p1, %p98_p8  ;;  %s2150_s4 = sshll.u32 %s569_s17, 4 }
  0x45   : > { %s2272_s24 = sshll.u32 %s3027_s27, 4  ;;  %s3692_s1 = sld [smem:[#allocation37_spill]] }
  0x46   : > { %s573_s21 = scalar_lea.vmem [#allocation2], %s2150_s4  ;;  %s3693_s6 = sld [smem:[#allocation28_spill]] }
  0x47   : > { %s581_s0 = sshll.u32 %s573_s21, 4  ;;  %p2355_p12 = pnand %p2373_p9, %p94_p10  ;;  %s582_s0 = int_to_ptr.vmem [resolvable:$true] %s581_s0 }
  0x48   : > { %s570_s2 = scalar_lea.sflag [#allocation3], %s569_s17  ;;  %s3045_s7 = smov 128  }
  0x49   : > { %s3046_s18 = smov 8   ;;  %s2139_s14 = sadd.s32 4294967294, %s3031_s28  }
  0x4a   : > { %s50_s4 = sadd.s32 1, %s3027_s27  ;;  %s139_s15 = sadd.s32 1, %s2999_s20 }
  0x4b   : > { %s578_s30 = scalar_lea.hbm %s3692_s1, %s2272_s24  ;;  %s47_s24 = sadd.s32 1, %s3023_s26 }
  0x4c   : > { %s579_s3 = sshll.u32 %s578_s30, 4  ;;  %p48_p13 = scmp.ge.s32.totalorder %s47_s24, 2  ;;  %s580_s3 = int_to_ptr.hbm [resolvable:$true] %s579_s3 }
  0x4d   : > { %2357 = dma.hbm_to_vmem [thread:$0]  (!%p2355_p12), %s580_s3, 256, %s582_s0, %s570_s2, %s3045_s7, %s3045_s7, %s3046_s18  }
  0x4e   : > { %p146_p0 = scmp.ne.s32.totalorder %s2999_s20, %s2995_s19  ;;  %p152_p2 = scmp.ne.s32.totalorder %s2995_s19, %s3693_s6 }
  0x4f   : > { %s3739_s24 = smov (%p48_p13, %s47_s24), 0  ;;  %s3741_s4 = smov (!%p48_p13, %s50_s4), %s3027_s27 }
  0x50   : > { %3694 = sst [smem:[#allocation32_spill]] %s3739_s24  ;;  %s135_s17 = ssub.s32 %s3023_s26, %s3739_s24 }
  0x51   : > { %p3308_p4 = por %p146_p0, %p93_p7  ;;  %p52_p5 = scmp.ge.s32.totalorder %s3741_s4, 2 }
  0x52   : > { %p3314_p6 = por %p152_p2, %p3655_p1  ;;  %p414_p8 = scmp.eq.s32.totalorder %s3193_s29, 3 }
  0x53   : > { %p420_p10 = scmp.eq.s32.totalorder %s2139_s14, 3  ;;  %s3743_s4 = smov (%p52_p5, %s3741_s4), 0 }
  0x54   : > { %3697 = sst [smem:[#allocation33_spill]] %s3743_s4  ;;  %p3321_p12 = por %p414_p8, %p146_p0 }
  0x55   : > { %p3325_p7 = por %p420_p10, %p152_p2  ;;  %s82_s0 = ssub.s32 %s3027_s27, %s3743_s4 }
  0x56   : > { %s3698_s21 = scalar_select %p3321_p12, 1, 0 }
  0x57   : > { %s3700_s6 = scalar_select %p3325_p7, 1, 0 }
  0x58   : > { %3699 = sst [smem:[#allocation34_spill]] %s3698_s21  ;;  %s598_s3 = sand.u32 1, %s3031_s28  }
  0x59   : > { %3701 = sst [smem:[#allocation35_spill]] %s3700_s6  ;;  %p83_p13 = scmp.eq.s32.totalorder %s82_s0, 0 }
  0x5a   : > { %s136_s2 = sor.u32 %s135_s17, %s82_s0  ;;  %s600_s14 = sand.u32 1, %s2999_s20  }
  0x5b   : > { %p137_p1 = scmp.eq.s32.totalorder %s136_s2, 0  ;;  %s2154_s1 = sshll.u32 %s3027_s27, 1 }
  0x5c   : > { %s3335_s7 = scalar_select %p83_p13, %s3011_s23, %s85_s5  }
  0x5d   : > { %s3338_s18 = scalar_select %p137_p1, %s2999_s20, %s139_s15  }
  0x5e   : > { %s2153_s8 = sshll.u32 %s600_s14, 3  ;;  %s606_s9 = sadd.s32 %s3023_s26, %s2154_s1 }
  0x5f   : > { %s2155_s10 = sshll.u32 %s606_s9, 3  ;;  %s3702_s13 = sld [smem:[#allocation39_spill]] }
  0x60   : > { %s602_s24 = scalar_lea.vmem [#allocation5], %s2153_s8  ;;  %p2358_p0 = pnand %p2373_p9, %p3308_p4 }
  0x61   : > { %s612_s6 = sshll.u32 %s602_s24, 4  ;;  %s599_s5 = scalar_lea.sflag [#allocation6], %s598_s3  ;;  %s613_s6 = int_to_ptr.vmem [resolvable:$true] %s612_s6 }
  0x62   : > { %s629_s1 = sand.u32 (!%p3201_p3), 1, %s3007_s22  }
  0x63   : > { %627 = sbr.rel (%p3201_p3) target bundleno = 3279 (0xccf), region = 80  ;;  %s3353_s9 = sshll.u32 (!%p3201_p3), %s629_s1, 4 }
  0x64   : > { %s633_s8 = scalar_lea.vmem (!%p3201_p3), [#allocation2], %s3353_s9 }
  0x65   : > { %s608_s4 = scalar_lea.hbm %s3702_s13, %s2155_s10  ;;  %s630_s10 = scalar_lea.sflag (!%p3201_p3), [#allocation3], %s629_s1 }
  0x66   : > { %s610_s21 = sshll.u32 %s608_s4, 4  ;;  %s611_s21 = int_to_ptr.hbm [resolvable:$true] %s610_s21 }
  0x67   : > { %2360 = dma.hbm_to_vmem [thread:$0]  (!%p2358_p0), %s611_s21, 128, %s613_s6, %s599_s5  }
  0x68   : > { %2958 = dma.done.wait (%p3283_p11), %s630_s10, 256  }
  0x69   : > { %2960 = vsyncadd (%p3283_p11), %s630_s10, 4294967040  ;;  %s639_s11 = sand.u32 1, %s3193_s29   ;;  %s641_s12 = sand.u32 1, %s2995_s19  }
  0x6a   : > { %s3364_s13 = sshll.u32 %s641_s12, 3  ;;  %s640_s24 = scalar_lea.sflag [#allocation6], %s639_s11 }
  0x6b   : > { %s643_s4 = scalar_lea.vmem [#allocation5], %s3364_s13 }
  0x6c   : > { %2962 = dma.done.wait (%p3314_p6), %s640_s24, 128  }
  0x6d   : > { %2964 = vsyncadd (%p3314_p6), %s640_s24, 4294967168  ;;  %p3704_p1 = scmp.eq.s32.totalorder %s3193_s29, 0 }
  0x6f   : > { %2966 = dma.done.wait (%p3704_p1), [#allocation6], 240   ;;  %p3705_p3 = pmov %p3704_p1 }
  0x70   : > { %p3706_p9 = pmov %p3704_p1 }
  0x71   : > { %2968 = vsyncadd (%p3705_p3), [#allocation6], 4294967056 }
  0x72   : > { %2970 = dma.done.wait (%p3706_p9), [#allocation9], 512   ;;  %p3707_p11 = pmov %p3704_p1 }
  0x73   : > { %p3708_p2 = pmov %p3704_p1 }
  0x74   : > { %2972 = vsyncadd (%p3707_p11), [#allocation9], 4294966784 }
  0x75   : > { %2974 = dma.done.wait (%p3708_p2), [#allocation12], 512   ;;  %p3709_p4 = pmov %p3704_p1 }
  0x76   : > { %p3710_p5 = pmov %p3704_p1 }
  0x77   : > { %2976 = vsyncadd (%p3709_p4), [#allocation12], 4294966784 }
  0x78   : > { %2978 = dma.done.wait (%p3710_p5), [#allocation15], 512   ;;  %p3711_p6 = pmov %p3704_p1 }
  0x79   : > { %p3712_p8 = pmov %p3704_p1 }
  0x7a   : > { %2980 = vsyncadd (%p3711_p6), [#allocation15], 4294966784 }
  0x7b   : > { %2982 = dma.done.wait (%p3712_p8), [#allocation18], 256   ;;  %p3713_p10 = pmov %p3704_p1 }
  0x7c   : > { %s3714_s16 = sld [smem:[#allocation30_spill]]  ;;  %vm780_vm0 = vcmask 261120   ;;  %v768_v0 = vld [vmem:[%s633_s8] sm:$0xff]  ;;  %v769_v4 = vld [vmem:[%s633_s8 + $0x8] sm:$0xff]  ;;  %v3047_v6 = vmov 32.0   ;;  %s3048_s5 = smov 120  }
  0x7d   : > { %2984 = vsyncadd (%p3713_p10), [#allocation18], 4294967040  ;;  %s3715_s17 = sld [smem:[#allocation29_spill]]  ;;  %v818_v1 = vsel %vm780_vm0, %v768_v0, 0.0  ;;  %v821_v5 = vsel %vm780_vm0, %v769_v4, 0.0  ;;  %2541 = vrcp.f32 %v3047_v6  ;;  %v2276_v28 = vld [vmem:[#allocation10 + $0x8] sm:$0xff] }
  0x7e   : > { %s3716_s2 = sld [smem:[#allocation36_spill]]  ;;  %819 = vadd.xlane.f32.xlu0 %v818_v1  ;;  %930 = vmatpush.bf16.msra.mxu1 %v2276_v28  ;;  %v2275_v31 = vld [vmem:[#allocation10] sm:$0xff]  ;;  %v2274_v33 = vld [vmem:[#allocation8 + $0x8] sm:$0xff]  ;;  %v2273_v35 = vld [vmem:[#allocation8] sm:$0xff]  ;;  %s3049_s15 = smov 112   ;;  %vm1033_vm11 = vcmask 64512  }
  0x7f   : > { %897 = vmatpush.bf16.msra.mxu0 %v2274_v33  ;;  %v2525_v55 = vld [vmem:[#allocation7] ss:$0 sm:$0xff]  ;;  %v2526_v61 = vld [vmem:[#allocation7 + $0x1] ss:$0 sm:$0xff]  ;;  %s3050_s1 = smov 104   ;;  %s3051_s9 = smov 32  }
  0x80   : > { %vm1125_vm13 = vcmask 130048   ;;  %s3053_s10 = smov 96   ;;  %s3054_s8 = smov 16   ;;  %vm1284_vm14 = vcmask 195584  }
  0x81   : > { %s3055_s11 = smov 8   ;;  %s3056_s24 = smov 24  }
  0x82   : > { %p751_p13 = scmp.lt.s32.totalorder %s3714_s16, 1  ;;  %931 = vmatpush.bf16.msra.mxu1 %v2275_v31  ;;  %v2529_v31 = vld [vmem:[#allocation7 + $0x8] ss:$0 sm:$0xff] }
  0x83   : > { %p753_p0 = scmp.lt.s32.totalorder %s3715_s17, 1  ;;  %v2542_v7 = vpop.eup %2541  ;;  %898 = vmatpush.bf16.msra.mxu0 %v2273_v35 }
  0x84   : > { %s3394_s25 = scalar_select %p751_p13, %s3714_s16, 1  ;;  %v785_v8 = vmul.f32 32.0, %v2542_v7  ;;  %vm789_vm1 = vweird.f32 %v2542_v7 }
  0x85   : > { %s754_s30 = scalar_select %p753_p0, %s3715_s17, 1 }
  0x86   : > { %s2168_s21 = sshll.u32 %s3394_s25, 1  ;;  %822 = vadd.xlane.f32.xlu0 %v821_v5  ;;  %v786_v9 = vsub.f32 1.0, %v785_v8 }
  0x87   : > { %s756_s6 = sadd.s32 %s2168_s21, %s754_s30  ;;  %s3720_s21 = sld [smem:[#allocation42_spill]] }
  0x88   : > { %s2169_s0 = sshll.u32 %s756_s6, 3  ;;  %v787_v10 = vmul.f32 %v2542_v7, %v786_v9  ;;  %s3717_s6 = sld [smem:[#allocation38_spill]] }
  0x89   : > { %s758_s14 = scalar_lea.vmem %s3716_s2, %s2169_s0  ;;  %s3718_s2 = sld [smem:[#allocation40_spill]] }
  0x8a   : > { %v3404_v2 = vld [vmem:[%s758_s14] sm:$0xff]  ;;  %v788_v11 = vadd.f32 %v2542_v7, %v787_v10 }
  0x8b   : > { %v781_v3 = vsel %vm780_vm0, %v3404_v2, 0.0 }
  0x8c   : > { %782 = vadd.xlane.f32.xlu1 %v781_v3  ;;  %v3411_v12 = vsel %vm789_vm1, %v2542_v7, %v788_v11 }
  0x8f   : > { %s765_s14 = scalar_lea.vmem %s3718_s2, %s3394_s25 }
  0xf1   : > { %v820_v13 = vpop.xlane.xlu0 %819 }
  0xf2   : > { %v824_v14 = vmul.f32 %v820_v13, %v3411_v12 }
  0xf4   : > { %v826_v15 = vsub.f32 %v768_v0, %v824_v14  ;;  %v2527_v14 = vld [vmem:[#allocation7 + $0x7] ss:$0 sm:$0xff] }
  0xf6   : > { %v828_v16 = vmul.f32 %v826_v15, %v826_v15 }
  0xf8   : > { %v830_v18 = vsel %vm780_vm0, %v828_v16, 0.0  ;;  %v2528_v16 = vld [vmem:[#allocation7 + $0x6] ss:$0 sm:$0xff] }
  0xf9   : > { %v823_v19 = vpop.xlane.xlu0 %822  ;;  %831 = vadd.xlane.f32.xlu1 %v830_v18 }
  0xfa   : > { %v825_v20 = vmul.f32 %v823_v19, %v3411_v12 }
  0xfc   : > { %v827_v22 = vsub.f32 %v769_v4, %v825_v20 }
  0xfe   : > { %v829_v23 = vmul.f32 %v827_v22, %v827_v22 }
  0xff   : > { %v783_v17 = vpop.xlane.xlu1 %782 }
 0x100   : > { %v791_v21 = vmul.f32 %v3411_v12, %v783_v17  ;;  %v833_v25 = vsel %vm780_vm0, %v829_v23, 0.0 }
 0x101   : > { %834 = vadd.xlane.f32.xlu2 %v833_v25 }
 0x102   : > { %v3418_v24 = vsub.f32 %v3404_v2, %v791_v21 }
 0x104   : > { %v793_v26 = vmul.f32 %v3418_v24, %v3418_v24 }
 0x106   : > { %v794_v27 = vsel %vm780_vm0, %v793_v26, 0.0 }
 0x109   : > { %795 = vadd.xlane.f32.xlu2 %v794_v27 }
 0x16c   : > { %v832_v29 = vpop.xlane.xlu1 %831 }
 0x16d   : > { %v836_v30 = vmul.f32 %v832_v29, %v3411_v12 }
 0x16f   : > { %v838_v32 = vadd.f32 1e-06, %v836_v30 }
 0x171   : > { %2543 = vrsqrt.f32 %v838_v32  ;;  %vm846_vm3 = vweird.f32 %v838_v32 }
 0x174   : > { %v835_v34 = vpop.xlane.xlu2 %834 }
 0x175   : > { %v837_v36 = vmul.f32 %v835_v34, %v3411_v12 }
 0x177   : > { %v2544_v37 = vpop.eup %2543  ;;  %v839_v38 = vadd.f32 1e-06, %v837_v36 }
 0x178   : > { %v841_v39 = vmul.f32 %v2544_v37, %v838_v32  ;;  %vm847_vm2 = vweird.f32 %v2544_v37 }
 0x179   : > { %2545 = vrsqrt.f32 %v839_v38  ;;  %vm848_vm4 = vmor %vm846_vm3, %vm847_vm2  ;;  %vm856_vm6 = vweird.f32 %v839_v38 }
 0x17a   : > { %v842_v40 = vmul.f32 %v2544_v37, %v841_v39 }
 0x17c   : > { %v843_v41 = vmul.f32 0.5, %v842_v40  ;;  %v796_v42 = vpop.xlane.xlu2 %795 }
 0x17d   : > { %v797_v43 = vmul.f32 %v796_v42, %v3411_v12 }
 0x17e   : > { %v844_v44 = vsub.f32 1.5, %v843_v41 }
 0x17f   : > { %v2546_v45 = vpop.eup %2545  ;;  %v798_v46 = vadd.f32 1e-06, %v797_v43 }
 0x180   : > { %v845_v47 = vmul.f32 %v2544_v37, %v844_v44  ;;  %v851_v48 = vmul.f32 %v2546_v45, %v839_v38  ;;  %vm857_vm5 = vweird.f32 %v2546_v45 }
 0x181   : > { %2547 = vrsqrt.f32 %v798_v46  ;;  %vm858_vm7 = vmor %vm856_vm6, %vm857_vm5  ;;  %vm805_vm8 = vweird.f32 %v798_v46 }
 0x182   : > { %v852_v49 = vmul.f32 %v2546_v45, %v851_v48  ;;  %v849_v50 = vsel %vm848_vm4, %v2544_v37, %v845_v47  ;;  %vm1625_vm4 = vcmask 1043456  }
 0x183   : > { %v860_v54 = vmul.f32 %v849_v50, %v826_v15 }
 0x184   : > { %v853_v51 = vmul.f32 0.5, %v852_v49 }
 0x185   : > { %v862_v62 = vmul.f32 %v2525_v55, %v860_v54 }
 0x186   : > { %v854_v52 = vsub.f32 1.5, %v853_v51 }
 0x187   : > { %v2548_v53 = vpop.eup %2547  ;;  %v864_v3 = vadd.f32 %v2526_v61, %v862_v62 }
 0x188   : > { %v855_v56 = vmul.f32 %v2546_v45, %v854_v52  ;;  %v800_v57 = vmul.f32 %v2548_v53, %v798_v46  ;;  %vm806_vm9 = vweird.f32 %v2548_v53 }
 0x189   : > { %vm807_vm10 = vmor %vm805_vm8, %vm806_vm9  ;;  %vm1878_vm8 = vcmask 523264  }
 0x18a   : > { %v859_v58 = vsel %vm858_vm7, %v2546_v45, %v855_v56  ;;  %v801_v59 = vmul.f32 %v2548_v53, %v800_v57 }
 0x18b   : > { %v861_v60 = vmul.f32 %v859_v58, %v827_v22 }
 0x18c   : > { %v802_v63 = vmul.f32 0.5, %v801_v59 }
 0x18d   : > { %v863_v0 = vmul.f32 %v2525_v55, %v861_v60 }
 0x18e   : > { %v803_v1 = vsub.f32 1.5, %v802_v63 }
 0x18f   : > { %v865_v4 = vadd.f32 %v2526_v61, %v863_v0 }
 0x190   : > { %v804_v5 = vmul.f32 %v2548_v53, %v803_v1 }
 0x191   : > { %v904_v6 = vpack.c.bf16 %v865_v4, %v864_v3 }
 0x192   : > { %v808_v7 = vsel %vm807_vm10, %v2548_v53, %v804_v5 }
 0x193   : > { %2188 = vmatmul.msk.bf16.vlgmr.msra.gmra.mxu1 %vm780_vm0, %v904_v6  ;;  %v809_v8 = vmul.f32 %v808_v7, %v3418_v24 }
 0x195   : > { %v813_v9 = vmul.f32 %v2525_v55, %v809_v8 }
 0x197   : > { %v817_v10 = vadd.f32 %v2526_v61, %v813_v9 }
 0x199   : > { %v866_v11 = vpack.c.bf16 %v817_v10, %v817_v10 }
 0x19b   : > { %2179 = vmatmul.msk.bf16.vlgmr.msra.gmra.mxu0 %vm780_vm0, %v866_v11 }
 0x210   : > { %v3430_v13 = vpop.f32.mrf.mxu1 }
 0x211   : > { %v943_v15 = vadd.f32 %v2527_v14, %v3430_v13 }
 0x213   : > { %v992_v21 = vpack.c.bf16 %v943_v15, %v943_v15 }
 0x215   : > { %v1030_v24 = vunpack.c.l.b16 %v992_v21 }
 0x218   : > { %v900_v17 = vpop.f32.mrf.mxu0  ;;  %v3433_v18 = vpop.f32.mrf.mxu1 }
 0x219   : > { %v901_v19 = vadd.f32 %v2528_v16, %v900_v17  ;;  %v944_v20 = vadd.f32 %v2527_v14, %v3433_v18  ;;  %v771_v16 = vld [vmem:[%s643_s4] sm:$0xff]  ;;  %v3052_v17 = vmov -1e+30   ;;  %s2170_s4 = sshll.u32 %s3394_s25, 3 }
 0x21a   : > { %vm772_vm12 = vcmp.gt.f32.partialorder %v771_v16, 0.0  ;;  %s762_s0 = scalar_lea.vmem %s3717_s6, %s2170_s4  ;;  %s2268_s6 = sshll.u32 %s3714_s16, 1 }
 0x21b   : > { %955 = vrot.lane.b32.xlu1 %v901_v19, %s3048_s5  ;;  %v2500_v22 = vpack.i.bf16 %v944_v20, %v943_v15  ;;  %v993_v23 = vpack.c.bf16 %v944_v20, %v944_v20  ;;  %v964_v29 = vmul.f32 0.35355338, %v901_v19  ;;  %s1898_s16 = scalar_lea.sflag [#allocation4], %s641_s12 }
 0x21d   : > { %2501 = vrot.lane.b32.xlu2 %v2500_v22, %s3049_s15  ;;  %2496 = vrot.lane.b32.xlu0 %v2500_v22, %s3048_s5  ;;  %v1031_v25 = vunpack.c.l.b16 %v993_v23  ;;  %v968_v30 = vpack.c.bf16 %v964_v29, %v964_v29 }
 0x21f   : > { %v1032_v26 = vpack.c.b16 %v1031_v25, %v1030_v24 }
 0x220   : > { %v902_v27 = vpop.f32.mrf.mxu0 }
 0x221   : > { %v1038_v28 = vsel %vm1033_vm11, %v1032_v26, 0 }
 0x222   : > { %1047 = vmatpush.bf16.xpose.msra.mxu2 %v1038_v28 }
 0x223   : > { %961 = vrot.lane.b32.xlu1 %v901_v19, %s3050_s1 }
 0x225   : > { %958 = vrot.lane.b32.xlu2 %v901_v19, %s3049_s15  ;;  %2506 = vrot.lane.b32.xlu0 %v2500_v22, %s3050_s1 }
 0x229   : > { %2189 = vmatmul.msk.bf16.vlgmr.msra.gmra.mxu2 %vm1033_vm11, %v968_v30 }
 0x22d   : > { %949 = vrot.lane.b32.xlu0 %v2529_v31, %s3051_s9 }
 0x277   : > { %v2502_v32 = vpop.permute.xlu2 %2501 }
 0x278   : > { %v2504_v33 = vunpack.i.h.bf16 %v2502_v32  ;;  %v2503_v34 = vunpack.i.l.bf16 %v2502_v32 }
 0x27a   : > { %v997_v35 = vpack.c.bf16 %v2504_v33, %v2504_v33  ;;  %v996_v36 = vpack.c.bf16 %v2503_v34, %v2503_v34 }
 0x27c   : > { %v1080_v37 = vunpack.c.l.b16 %v997_v35  ;;  %v1079_v38 = vunpack.c.l.b16 %v996_v36 }
 0x27e   : > { %v1081_v39 = vpack.c.b16 %v1080_v37, %v1079_v38 }
 0x27f   : > { %v959_v40 = vpop.permute.xlu2 %958 }
 0x280   : > { %v1086_v41 = vsel %vm1033_vm11, %v1081_v39, 0  ;;  %v966_v42 = vmul.f32 0.35355338, %v959_v40 }
 0x281   : > { %1095 = vmatpush.bf16.xpose.msrb.mxu0 %v1086_v41 }
 0x282   : > { %v970_v43 = vpack.c.bf16 %v966_v42, %v966_v42 }
 0x288   : > { %2191 = vmatmul.msk.bf16.vlgmr.msrb.gmra.mxu0 %vm1033_vm11, %v970_v43 }
 0x28d   : > { %v956_v51 = vpop.permute.xlu1 %955 }
 0x28e   : > { %v965_v57 = vmul.f32 0.35355338, %v956_v51 }
 0x28f   : > { %v2497_v44 = vpop.permute.xlu0 %2496 }
 0x290   : > { %v2499_v45 = vunpack.i.h.bf16 %v2497_v44  ;;  %v2498_v46 = vunpack.i.l.bf16 %v2497_v44  ;;  %v969_v62 = vpack.c.bf16 %v965_v57, %v965_v57 }
 0x292   : > { %v995_v47 = vpack.c.bf16 %v2499_v45, %v2499_v45  ;;  %v994_v48 = vpack.c.bf16 %v2498_v46, %v2498_v46 }
 0x294   : > { %v1056_v49 = vunpack.c.l.b16 %v995_v47  ;;  %v1055_v50 = vunpack.c.l.b16 %v994_v48 }
 0x295   : > { %v962_v0 = vpop.permute.xlu1 %961 }
 0x296   : > { %v1057_v52 = vpack.c.b16 %v1056_v49, %v1055_v50  ;;  %v967_v6 = vmul.f32 0.35355338, %v962_v0 }
 0x297   : > { %v2507_v53 = vpop.permute.xlu0 %2506 }
 0x298   : > { %v2509_v54 = vunpack.i.h.bf16 %v2507_v53  ;;  %v2508_v55 = vunpack.i.l.bf16 %v2507_v53  ;;  %v1062_v56 = vsel %vm1033_vm11, %v1057_v52, 0  ;;  %v971_v11 = vpack.c.bf16 %v967_v6, %v967_v6 }
 0x299   : > { %1071 = vmatpush.bf16.xpose.msra.mxu3 %v1062_v56 }
 0x29a   : > { %v999_v58 = vpack.c.bf16 %v2509_v54, %v2509_v54  ;;  %v998_v59 = vpack.c.bf16 %v2508_v55, %v2508_v55 }
 0x29c   : > { %v1104_v60 = vunpack.c.l.b16 %v999_v58  ;;  %v1103_v61 = vunpack.c.l.b16 %v998_v59 }
 0x29e   : > { %v1105_v63 = vpack.c.b16 %v1104_v60, %v1103_v61 }
 0x29f   : > { %v950_v1 = vpop.permute.xlu0 %949 }
 0x2a0   : > { %v952_v3 = vadd.f32 %v950_v1, %v3430_v13  ;;  %v953_v4 = vadd.f32 %v950_v1, %v3433_v18  ;;  %2190 = vmatmul.msk.bf16.vlgmr.msra.gmra.mxu3 %vm1033_vm11, %v969_v62  ;;  %v1110_v5 = vsel %vm1033_vm11, %v1105_v63, 0  ;;  %v773_v18 = vsel %vm772_vm12, 0.0, %v3052_v17 }
 0x2a1   : > { %1119 = vmatpush.bf16.xpose.msrb.mxu1 %v1110_v5 }
 0x2a2   : > { %v1020_v7 = vpack.c.bf16 %v952_v3, %v952_v3  ;;  %v1021_v8 = vpack.c.bf16 %v953_v4, %v953_v4  ;;  %v2515_v23 = vpack.i.bf16 %v953_v4, %v952_v3 }
 0x2a4   : > { %v3452_v9 = vunpack.c.l.b16 %v1020_v7  ;;  %v3454_v10 = vunpack.c.l.b16 %v1021_v8 }
 0x2a6   : > { %v1178_v14 = vpack.c.b16 %v3454_v10, %v3452_v9 }
 0x2a8   : > { %2192 = vmatmul.msk.bf16.vlgmr.msrb.gmra.mxu1 %vm1033_vm11, %v971_v11 }
 0x2ac   : > { %v1049_v13 = vpop.f32.mrf.mxu2 }
 0x2ad   : > { %v1050_v32 = vadd.f32 %v1049_v13, %v773_v18 }
 0x2af   : > { %v1126_v33 = vsel %vm1125_vm13, %v1050_v32, -inf }
 0x2b4   : > { %v1051_v15 = vpop.f32.mrf.mxu2 }
 0x305   : > { %v1097_v19 = vpop.f32.mrf.mxu0 }
 0x306   : > { %v1098_v20 = vadd.f32 %v1097_v19, %v773_v18 }
 0x308   : > { %v1132_v21 = vsel %vm1125_vm13, %v1098_v20, -inf }
 0x309   : > { %1133 = vmax.xlane.f32.xlu1 %v1132_v21 }
 0x30d   : > { %v1099_v22 = vpop.f32.mrf.mxu0 }
 0x322   : > { %2516 = vrot.lane.b32.xlu1 %v2515_v23, %s3049_s15 }
 0x323   : > { %v1073_v24 = vpop.f32.mrf.mxu3 }
 0x324   : > { %v1074_v25 = vadd.f32 %v1073_v24, %v773_v18 }
 0x325   : > { %v1121_v26 = vpop.f32.mrf.mxu1 }
 0x326   : > { %v1122_v27 = vadd.f32 %v1121_v26, %v773_v18  ;;  %v1129_v28 = vsel %vm1125_vm13, %v1074_v25, -inf }
 0x327   : > { %1130 = vmax.xlane.f32.xlu2 %v1129_v28 }
 0x328   : > { %v1135_v29 = vsel %vm1125_vm13, %v1122_v27, -inf }
 0x329   : > { %1136 = vmax.xlane.f32.xlu0 %v1135_v29 }
 0x32b   : > { %v1075_v30 = vpop.f32.mrf.mxu3 }
 0x32d   : > { %v1123_v31 = vpop.f32.mrf.mxu1 }
 0x33d   : > { %2521 = vrot.lane.b32.xlu0 %v2515_v23, %s3050_s1 }
 0x33f   : > { %2511 = vrot.lane.b32.xlu2 %v2515_v23, %s3048_s5 }
 0x368   : > { %1127 = vmax.xlane.f32.xlu2 %v1126_v33 }
 0x37c   : > { %v1134_v34 = vpop.xlane.xlu1 %1133 }
 0x37d   : > { %v1140_v35 = vsub.f32 %v1098_v20, %v1134_v34 }
 0x37f   : > { %v1146_v36 = vmul.f32 1.442695, %v1140_v35 }
 0x381   : > { %2549 = vpow2.f32 %v1146_v36 }
 0x387   : > { %v2550_v37 = vpop.eup %2549 }
 0x388   : > { %v1156_v38 = vsel %vm1125_vm13, %v2550_v37, 0.0 }
 0x389   : > { %1157 = vadd.xlane.f32.xlu1 %v1156_v38 }
 0x394   : > { %v2517_v39 = vpop.permute.xlu1 %2516 }
 0x395   : > { %v2519_v40 = vunpack.i.h.bf16 %v2517_v39  ;;  %v2518_v41 = vunpack.i.l.bf16 %v2517_v39 }
 0x397   : > { %v1025_v42 = vpack.c.bf16 %v2519_v40, %v2519_v40  ;;  %v1024_v43 = vpack.c.bf16 %v2518_v41, %v2518_v41 }
 0x399   : > { %v1225_v46 = vunpack.c.l.b16 %v1025_v42  ;;  %v1224_v47 = vunpack.c.l.b16 %v1024_v43 }
 0x39a   : > { %v1131_v44 = vpop.xlane.xlu2 %1130 }
 0x39b   : > { %v1139_v45 = vsub.f32 %v1074_v25, %v1131_v44  ;;  %v1226_v52 = vpack.c.b16 %v1225_v46, %v1224_v47  ;;  %v2278_v44 = vld [vmem:[#allocation11 + $0x8] sm:$0xff]  ;;  %v2277_v46 = vld [vmem:[#allocation11] sm:$0xff] }
 0x39c   : > { %v1137_v48 = vpop.xlane.xlu0 %1136 }
 0x39d   : > { %v1144_v49 = vmul.f32 1.442695, %v1139_v45  ;;  %v1141_v50 = vsub.f32 %v1122_v27, %v1137_v48 }
 0x39f   : > { %2551 = vpow2.f32 %v1144_v49  ;;  %v1148_v51 = vmul.f32 1.442695, %v1141_v50 }
 0x3a1   : > { %2553 = vpow2.f32 %v1148_v51 }
 0x3a2   : > { %1227 = vrot.lane.b32.xlu1 %v1226_v52, %s3053_s10  ;;  %v2512_v57 = vpop.permute.xlu2 %2511 }
 0x3a3   : > { %v2514_v58 = vunpack.i.h.bf16 %v2512_v57  ;;  %v2513_v59 = vunpack.i.l.bf16 %v2512_v57 }
 0x3a5   : > { %v2552_v53 = vpop.eup %2551  ;;  %v1023_v61 = vpack.c.bf16 %v2514_v58, %v2514_v58  ;;  %v1022_v62 = vpack.c.bf16 %v2513_v59, %v2513_v59 }
 0x3a6   : > { %v1153_v54 = vsel %vm1125_vm13, %v2552_v53, 0.0 }
 0x3a7   : > { %v2554_v55 = vpop.eup %2553  ;;  %1154 = vadd.xlane.f32.xlu0 %v1153_v54  ;;  %v1201_v1 = vunpack.c.l.b16 %v1023_v61  ;;  %v1200_v3 = vunpack.c.l.b16 %v1022_v62  ;;  %v2530_v54 = vld [vmem:[#allocation7 + $0x9] ss:$0 sm:$0xff]  ;;  %v2281_v61 = vld [vmem:[#allocation14] sm:$0xff] }
 0x3a8   : > { %v1159_v56 = vsel %vm1125_vm13, %v2554_v55, 0.0  ;;  %v770_v62 = vld [vmem:[%s762_s0] sm:$0xff]  ;;  %s1908_s0 = sadd.s32 %s3715_s17, %s2268_s6 }
 0x3a9   : > { %1160 = vadd.xlane.f32.xlu2 %v1159_v56  ;;  %v1202_v6 = vpack.c.b16 %v1201_v1, %v1200_v3  ;;  %s2269_s29 = sshll.u32 %s1908_s0, 3 }
 0x3aa   : > { %1179 = vrot.lane.b32.xlu1 %v1178_v14, %s3053_s10 }
 0x3af   : > { %v2522_v60 = vpop.permute.xlu0 %2521 }
 0x3b0   : > { %v2524_v63 = vunpack.i.h.bf16 %v2522_v60  ;;  %v2523_v0 = vunpack.i.l.bf16 %v2522_v60  ;;  %v2282_v60 = vld [vmem:[#allocation14 + $0x8] sm:$0xff] }
 0x3b2   : > { %v1027_v4 = vpack.c.bf16 %v2524_v63, %v2524_v63  ;;  %v1026_v5 = vpack.c.bf16 %v2523_v0, %v2523_v0  ;;  %v1397_v63 = vpack.c.bf16 %v770_v62, %v770_v62 }
 0x3b4   : > { %v1249_v7 = vunpack.c.l.b16 %v1027_v4  ;;  %v1248_v8 = vunpack.c.l.b16 %v1026_v5  ;;  %v2280_v5 = vld [vmem:[#allocation13 + $0x8] sm:$0xff] }
 0x3b6   : > { %v1250_v9 = vpack.c.b16 %v1249_v7, %v1248_v8  ;;  %v2533_v8 = vld [vmem:[#allocation7 + $0xb] ss:$0 sm:$0xff] }
 0x3bb   : > { %1203 = vrot.lane.b32.xlu0 %v1202_v6, %s3053_s10  ;;  %v2279_v6 = vld [vmem:[#allocation13] sm:$0xff] }
 0x3c1   : > { %1251 = vrot.lane.b32.xlu2 %v1250_v9, %s3053_s10 }
 0x3db   : > { %v1128_v10 = vpop.xlane.xlu2 %1127 }
 0x3dc   : > { %v1138_v11 = vsub.f32 %v1050_v32, %v1128_v10 }
 0x3de   : > { %v1142_v14 = vmul.f32 1.442695, %v1138_v11 }
 0x3e0   : > { %2555 = vpow2.f32 %v1142_v14 }
 0x3e6   : > { %v2556_v13 = vpop.eup %2555 }
 0x3e7   : > { %v1150_v15 = vsel %vm1125_vm13, %v2556_v13, 0.0 }
 0x3e8   : > { %1151 = vadd.xlane.f32.xlu0 %v1150_v15 }
 0x3fc   : > { %v1158_v16 = vpop.xlane.xlu1 %1157 }
 0x3fd   : > { %2557 = vrcp.f32 %v1158_v16 }
 0x403   : > { %v2558_v18 = vpop.eup %2557 }
 0x404   : > { %v1168_v19 = vmul.f32 %v2558_v18, %v2550_v37 }
 0x406   : > { %v1172_v21 = vpack.c.bf16 %v1168_v19, %v1168_v19 }
 0x414   : > { %v1228_v20 = vpop.permute.xlu1 %1227 }
 0x415   : > { %1240 = vmatpush.bf16.msra.mxu0 %v1228_v20 }
 0x418   : > { %2195 = vmatmul.msk.bf16.vlgmr.msra.gmra.mxu0 %vm1125_vm13, %v1172_v21 }
 0x419   : > { %1423 = vmatpush.bf16.msrb.mxu0 %v2282_v60 }
 0x41a   : > { %v1155_v24 = vpop.xlane.xlu0 %1154 }
 0x41c   : > { %v1161_v22 = vpop.xlane.xlu2 %1160  ;;  %v1180_v23 = vpop.permute.xlu1 %1179 }
 0x41d   : > { %2559 = vrcp.f32 %v1161_v22  ;;  %1192 = vmatpush.bf16.msrb.mxu2 %v1180_v23  ;;  %1424 = vmatpush.bf16.msrb.mxu0 %v2281_v61 }
 0x41e   : > { %2561 = vrcp.f32 %v1155_v24  ;;  %v2531_v24 = vld [vmem:[#allocation7 + $0x2] ss:$0 sm:$0xff] }
 0x421   : > { %1317 = vmatpush.bf16.msra.mxu2 %v2278_v44 }
 0x423   : > { %v2560_v25 = vpop.eup %2559 }
 0x424   : > { %v1169_v26 = vmul.f32 %v2560_v25, %v2554_v55  ;;  %v1252_v27 = vpop.permute.xlu2 %1251  ;;  %v2562_v29 = vpop.eup %2561 }
 0x425   : > { %1264 = vmatpush.bf16.msra.mxu1 %v1252_v27  ;;  %v1167_v30 = vmul.f32 %v2562_v29, %v2552_v53  ;;  %1318 = vmatpush.bf16.msra.mxu2 %v2277_v46  ;;  %v2532_v27 = vld [vmem:[#allocation7 + $0x3] ss:$0 sm:$0xff] }
 0x426   : > { %v1173_v28 = vpack.c.bf16 %v1169_v26, %v1169_v26 }
 0x427   : > { %v1171_v32 = vpack.c.bf16 %v1167_v30, %v1167_v30 }
 0x428   : > { %2196 = vmatmul.msk.bf16.vlgmr.msra.gmra.mxu1 %vm1125_vm13, %v1173_v28  ;;  %2223 = vmatmul.msk.bf16.vlgmr.msrb.gmra.mxu0 %vm780_vm0, %v1397_v63 }
 0x42d   : > { %v1204_v31 = vpop.permute.xlu0 %1203 }
 0x42e   : > { %1216 = vmatpush.bf16.msrb.mxu3 %v1204_v31 }
 0x431   : > { %2194 = vmatmul.msk.bf16.vlgmr.msrb.gmra.mxu3 %vm1125_vm13, %v1171_v32 }
 0x432   : > { %1390 = vmatpush.bf16.msra.mxu3 %v2280_v5 }
 0x436   : > { %1391 = vmatpush.bf16.msra.mxu3 %v2279_v6 }
 0x45b   : > { %v1152_v33 = vpop.xlane.xlu0 %1151 }
 0x45c   : > { %2563 = vrcp.f32 %v1152_v33 }
 0x462   : > { %v2564_v34 = vpop.eup %2563 }
 0x463   : > { %v1166_v35 = vmul.f32 %v2564_v34, %v2556_v13 }
 0x465   : > { %v1170_v36 = vpack.c.bf16 %v1166_v35, %v1166_v35 }
 0x467   : > { %2193 = vmatmul.msk.bf16.vlgmr.msrb.gmra.mxu2 %vm1125_vm13, %v1170_v36 }
 0x495   : > { %v1242_v37 = vpop.f32.mrf.mxu0 }
 0x496   : > { %1275 = vrot.lane.b32.xlu1 %v1242_v37, %s3054_s8 }
 0x49d   : > { %v1244_v38 = vpop.f32.mrf.mxu0 }
 0x4a5   : > { %v1266_v39 = vpop.f32.mrf.mxu1  ;;  %v3501_v7 = vpop.f32.mrf.mxu0 }
 0x4a6   : > { %v1435_v11 = vadd.f32 %v2533_v8, %v3501_v7 }
 0x4a8   : > { %1463 = vrot.lane.b32.xlu0 %v1435_v11, %s3048_s5  ;;  %v1472_v13 = vpack.c.bf16 %v1435_v11, %v1435_v11 }
 0x4aa   : > { %v1497_v15 = vsel %vm1033_vm11, %v1472_v13, 0 }
 0x4ab   : > { %1506 = vmatpush.bf16.xpose.msrb.mxu1 %v1497_v15 }
 0x4ad   : > { %v1268_v40 = vpop.f32.mrf.mxu1  ;;  %v1428_v16 = vpop.f32.mrf.mxu0 }
 0x4b0   : > { %1466 = vrot.lane.b32.xlu0 %v1435_v11, %s3049_s15 }
 0x4b4   : > { %v1218_v41 = vpop.f32.mrf.mxu3 }
 0x4b5   : > { %1271 = vrot.lane.b32.xlu2 %v1218_v41, %s3055_s11 }
 0x4b8   : > { %1469 = vrot.lane.b32.xlu0 %v1435_v11, %s3050_s1 }
 0x4bc   : > { %v1220_v42 = vpop.f32.mrf.mxu3 }
 0x4bd   : > { %1279 = vrot.lane.b32.xlu2 %v1266_v39, %s3056_s24  ;;  %v2534_v39 = vld [vmem:[#allocation7 + $0xa] ss:$0 sm:$0xff] }
 0x4ea   : > { %v1194_v43 = vpop.f32.mrf.mxu2 }
 0x4f2   : > { %v1196_v45 = vpop.f32.mrf.mxu2 }
 0x4f3   : > { %v2535_v45 = vld [vmem:[#allocation7 + $0xc] ss:$0 sm:$0xff] }
 0x508   : > { %v1276_v49 = vpop.permute.xlu1 %1275 }
 0x50f   : > { %v1272_v47 = vpop.permute.xlu2 %1271 }
 0x510   : > { %v1282_v48 = vsel %vm1033_vm11, %v1194_v43, %v1272_v47 }
 0x511   : > { %v1283_v51 = vsel %vm1125_vm13, %v1282_v48, %v1276_v49 }
 0x517   : > { %v1280_v50 = vpop.permute.xlu2 %1279 }
 0x518   : > { %v1285_v52 = vsel %vm1284_vm14, %v1283_v51, %v1280_v50 }
 0x519   : > { %v1286_v53 = vpack.c.bf16 %v1285_v52, %v1285_v52 }
 0x51a   : > { %v1464_v31 = vpop.permute.xlu0 %1463 }
 0x51b   : > { %2205 = vmatmul.msk.bf16.vlgmr.msra.gmra.mxu2 %vm780_vm0, %v1286_v53  ;;  %v1473_v32 = vpack.c.bf16 %v1464_v31, %v1464_v31 }
 0x51d   : > { %v1516_v33 = vsel %vm1033_vm11, %v1473_v32, 0 }
 0x51e   : > { %1525 = vmatpush.bf16.xpose.msrb.mxu2 %v1516_v33 }
 0x522   : > { %v1467_v34 = vpop.permute.xlu0 %1466 }
 0x523   : > { %v1474_v35 = vpack.c.bf16 %v1467_v34, %v1467_v34 }
 0x525   : > { %v1535_v36 = vsel %vm1033_vm11, %v1474_v35, 0 }
 0x526   : > { %1544 = vmatpush.bf16.xpose.msrb.mxu3 %v1535_v36 }
 0x52a   : > { %v1470_v37 = vpop.permute.xlu0 %1469 }
 0x52b   : > { %v1475_v38 = vpack.c.bf16 %v1470_v37, %v1470_v37 }
 0x52d   : > { %v1554_v40 = vsel %vm1033_vm11, %v1475_v38, 0 }
 0x52e   : > { %1563 = vmatpush.bf16.xpose.msra.mxu0 %v1554_v40 }
 0x59e   : > { %v1320_v55 = vpop.f32.mrf.mxu2 }
 0x59f   : > { %v1321_v56 = vadd.f32 %v2530_v54, %v1320_v55 }
 0x5a1   : > { %v3489_v57 = vadd.f32 %v1321_v56, %v3404_v2 }
 0x5a3   : > { %v1329_v58 = vsel %vm780_vm0, %v3489_v57, 0.0 }
 0x5a4   : > { %1330 = vadd.xlane.f32.xlu1 %v1329_v58 }
 0x5a6   : > { %v1322_v59 = vpop.f32.mrf.mxu2 }
 0x5a7   : > { %v774_v59 = vld [vmem:[%s765_s14] sm:$0x1]  ;;  %s3721_s14 = sld [smem:[#allocation51_spill]] }
 0x5a8   : > { %vm775_vm3 = vcmp.gt.f32.partialorder %v774_v59, 0.0 }
 0x5a9   : > { %v776_v60 = vsel %vm775_vm3, 0.0, %v3052_v17 }
 0x5aa   : > { %v1491_v61 = vperm.slane %v776_v60, 0 }
 0x617   : > { %v1331_v2 = vpop.xlane.xlu1 %1330 }
 0x618   : > { %v1332_v0 = vmul.f32 %v1331_v2, %v3411_v12 }
 0x61a   : > { %v1333_v1 = vsub.f32 %v3489_v57, %v1332_v0 }
 0x61c   : > { %v1334_v3 = vmul.f32 %v1333_v1, %v1333_v1 }
 0x61e   : > { %v1335_v4 = vsel %vm780_vm0, %v1334_v3, 0.0 }
 0x61f   : > { %1336 = vadd.xlane.f32.xlu2 %v1335_v4 }
 0x692   : > { %v1337_v9 = vpop.xlane.xlu2 %1336 }
 0x693   : > { %v1338_v10 = vmul.f32 %v1337_v9, %v3411_v12 }
 0x695   : > { %v1339_v14 = vadd.f32 1e-06, %v1338_v10 }
 0x697   : > { %2565 = vrsqrt.f32 %v1339_v14  ;;  %vm1346_vm1 = vweird.f32 %v1339_v14 }
 0x69d   : > { %v2566_v18 = vpop.eup %2565 }
 0x69e   : > { %v1341_v19 = vmul.f32 %v2566_v18, %v1339_v14  ;;  %vm1347_vm15 = vweird.f32 %v2566_v18 }
 0x69f   : > { %vm1348_vm2 = vmor %vm1346_vm1, %vm1347_vm15 }
 0x6a0   : > { %v1342_v20 = vmul.f32 %v2566_v18, %v1341_v19 }
 0x6a2   : > { %v1343_v21 = vmul.f32 0.5, %v1342_v20 }
 0x6a4   : > { %v1344_v22 = vsub.f32 1.5, %v1343_v21 }
 0x6a6   : > { %v1345_v23 = vmul.f32 %v2566_v18, %v1344_v22 }
 0x6a8   : > { %v1349_v25 = vsel %vm1348_vm2, %v2566_v18, %v1345_v23 }
 0x6a9   : > { %v1350_v26 = vmul.f32 %v1349_v25, %v1333_v1 }
 0x6ab   : > { %v1354_v28 = vmul.f32 %v2531_v24, %v1350_v26 }
 0x6ad   : > { %v1358_v29 = vadd.f32 %v2532_v27, %v1354_v28 }
 0x6af   : > { %v1359_v30 = vpack.c.bf16 %v1358_v29, %v1358_v29 }
 0x6b1   : > { %2214 = vmatmul.msk.bf16.vlgmr.msra.gmra.mxu3 %vm780_vm0, %v1359_v30 }
 0x734   : > { %v1393_v41 = vpop.f32.mrf.mxu3 }
 0x735   : > { %v1394_v42 = vadd.f32 %v2534_v39, %v1393_v41 }
 0x737   : > { %v1454_v43 = vmul.f32 0.35355338, %v1394_v42  ;;  %1451 = vrot.lane.b32.xlu0 %v1394_v42, %s3050_s1  ;;  %1448 = vrot.lane.b32.xlu2 %v1394_v42, %s3049_s15 }
 0x738   : > { %1445 = vrot.lane.b32.xlu1 %v1394_v42, %s3048_s5 }
 0x739   : > { %v1458_v44 = vpack.c.bf16 %v1454_v43, %v1454_v43 }
 0x73b   : > { %2224 = vmatmul.msk.bf16.vlgmr.msrb.gmra.mxu1 %vm1033_vm11, %v1458_v44 }
 0x73c   : > { %v1395_v46 = vpop.f32.mrf.mxu3 }
 0x73f   : > { %1440 = vrot.lane.b32.xlu0 %v2535_v45, %s3051_s9 }
 0x791   : > { %v1449_v47 = vpop.permute.xlu2 %1448 }
 0x792   : > { %v1456_v48 = vmul.f32 0.35355338, %v1449_v47 }
 0x794   : > { %v1460_v49 = vpack.c.bf16 %v1456_v48, %v1456_v48 }
 0x796   : > { %2226 = vmatmul.msk.bf16.vlgmr.msrb.gmra.mxu3 %vm1033_vm11, %v1460_v49 }
 0x7a9   : > { %v1452_v50 = vpop.permute.xlu0 %1451 }
 0x7aa   : > { %v1457_v51 = vmul.f32 0.35355338, %v1452_v50  ;;  %v1446_v52 = vpop.permute.xlu1 %1445 }
 0x7ab   : > { %v1455_v53 = vmul.f32 0.35355338, %v1446_v52 }
 0x7ac   : > { %v1461_v54 = vpack.c.bf16 %v1457_v51, %v1457_v51 }
 0x7ad   : > { %v1459_v55 = vpack.c.bf16 %v1455_v53, %v1455_v53 }
 0x7ae   : > { %2227 = vmatmul.msk.bf16.vlgmr.msra.gmra.mxu0 %vm1033_vm11, %v1461_v54 }
 0x7af   : > { %2225 = vmatmul.msk.bf16.vlgmr.msrb.gmra.mxu2 %vm1033_vm11, %v1459_v55 }
 0x7b1   : > { %v1441_v5 = vpop.permute.xlu0 %1440 }
 0x7b2   : > { %v1443_v8 = vadd.f32 %v1441_v5, %v3501_v7 }
 0x7b4   : > { %v1486_v33 = vpack.c.bf16 %v1443_v8, %v1443_v8 }
 0x7b6   : > { %v1618_v35 = vunpack.c.l.b16 %v1486_v33 }
 0x7b8   : > { %v1508_v56 = vpop.f32.mrf.mxu1  ;;  %v1619_v36 = vpack.c.b16 %v1618_v35, %v1618_v35 }
 0x7b9   : > { %v1509_v14 = vadd.f32 %v1508_v56, %v1491_v61 }
 0x7bb   : > { %v1569_v13 = vsel %vm1033_vm11, %v1509_v14, -inf }
 0x7c0   : > { %v1510_v58 = vpop.f32.mrf.mxu1 }
 0x819   : > { %v1546_v62 = vpop.f32.mrf.mxu3 }
 0x81a   : > { %v1547_v63 = vadd.f32 %v1546_v62, %v1491_v61 }
 0x81c   : > { %v1575_v2 = vsel %vm1033_vm11, %v1547_v63, -inf }
 0x81d   : > { %1576 = vmax.xlane.f32.xlu2 %v1575_v2 }
 0x821   : > { %v1548_v0 = vpop.f32.mrf.mxu3 }
 0x82b   : > { %v1565_v1 = vpop.f32.mrf.mxu0 }
 0x82c   : > { %v1566_v3 = vadd.f32 %v1565_v1, %v1491_v61 }
 0x82e   : > { %v1578_v4 = vsel %vm1033_vm11, %v1566_v3, -inf }
 0x82f   : > { %1579 = vmax.xlane.f32.xlu0 %v1578_v4 }
 0x832   : > { %v1527_v6 = vpop.f32.mrf.mxu2 }
 0x833   : > { %v1528_v9 = vadd.f32 %v1527_v6, %v1491_v61  ;;  %v1567_v10 = vpop.f32.mrf.mxu0 }
 0x835   : > { %1480 = vrot.lane.b32.xlu2 %v1443_v8, %s3049_s15  ;;  %v1572_v17 = vsel %vm1033_vm11, %v1528_v9, -inf  ;;  %s3719_s15 = sld [smem:[#allocation50_spill]] }
 0x836   : > { %1573 = vmax.xlane.f32.xlu1 %v1572_v17 }
 0x83a   : > { %v1529_v11 = vpop.f32.mrf.mxu2 }
 0x843   : > { %1483 = vrot.lane.b32.xlu0 %v1443_v8, %s3050_s1  ;;  %s750_s1 = scalar_lea.vmem [#allocation19], %s3364_s13  ;;  %s2905_s13 = scalar_lea.hbm %s3721_s14, 32 }
 0x844   : > { %s1912_s9 = sshll.u32 %s750_s1, 4  ;;  %s1913_s9 = int_to_ptr.vmem [resolvable:$true] %s1912_s9 }
 0x84f   : > { %1477 = vrot.lane.b32.xlu1 %v1443_v8, %s3048_s5  ;;  %s1910_s5 = scalar_lea.hbm %s3721_s14, %s2269_s29 }
 0x86d   : > { %1570 = vmax.xlane.f32.xlu0 %v1569_v13 }
 0x890   : > { %v1577_v15 = vpop.xlane.xlu2 %1576 }
 0x891   : > { %v1583_v16 = vsub.f32 %v1547_v63, %v1577_v15 }
 0x893   : > { %v1589_v18 = vmul.f32 1.442695, %v1583_v16 }
 0x895   : > { %2567 = vpow2.f32 %v1589_v18 }
 0x898   : > { %v1481_v23 = vpop.permute.xlu2 %1480 }
 0x899   : > { %v1488_v26 = vpack.c.bf16 %v1481_v23, %v1481_v23 }
 0x89b   : > { %v2568_v7 = vpop.eup %2567  ;;  %v1667_v30 = vunpack.c.l.b16 %v1488_v26 }
 0x89c   : > { %v1599_v19 = vsel %vm1033_vm11, %v2568_v7, 0.0 }
 0x89d   : > { %1600 = vadd.xlane.f32.xlu1 %v1599_v19  ;;  %v1668_v32 = vpack.c.b16 %v1667_v30, %v1667_v30 }
 0x8a2   : > { %v1580_v20 = vpop.xlane.xlu0 %1579 }
 0x8a3   : > { %v1584_v21 = vsub.f32 %v1566_v3, %v1580_v20  ;;  %v2284_v20 = vld [vmem:[#allocation16 + $0x8] sm:$0xff] }
 0x8a5   : > { %v1591_v22 = vmul.f32 1.442695, %v1584_v21  ;;  %v2283_v21 = vld [vmem:[#allocation16] sm:$0xff] }
 0x8a7   : > { %2569 = vpow2.f32 %v1591_v22 }
 0x8a9   : > { %v1574_v24 = vpop.xlane.xlu1 %1573 }
 0x8aa   : > { %v1582_v25 = vsub.f32 %v1528_v9, %v1574_v24 }
 0x8ac   : > { %v1587_v27 = vmul.f32 1.442695, %v1582_v25 }
 0x8ad   : > { %v2570_v28 = vpop.eup %2569 }
 0x8ae   : > { %2571 = vpow2.f32 %v1587_v27  ;;  %v1602_v29 = vsel %vm1033_vm11, %v2570_v28, 0.0 }
 0x8af   : > { %1603 = vadd.xlane.f32.xlu2 %v1602_v29  ;;  %v2536_v29 = vld [vmem:[#allocation7 + $0xd] ss:$0 sm:$0xff] }
 0x8b4   : > { %v2572_v31 = vpop.eup %2571 }
 0x8b5   : > { %v1596_v34 = vsel %vm1033_vm11, %v2572_v31, 0.0  ;;  %v1484_v38 = vpop.permute.xlu0 %1483 }
 0x8b6   : > { %1669 = vrot.lane.b32.xlu1 %v1668_v32, %s3053_s10  ;;  %v1489_v41 = vpack.c.bf16 %v1484_v38, %v1484_v38 }
 0x8b7   : > { %1597 = vadd.xlane.f32.xlu2 %v1596_v34 }
 0x8b8   : > { %v1691_v43 = vunpack.c.l.b16 %v1489_v41  ;;  %v2285_v41 = vld [vmem:[#allocation17] sm:$0xff] }
 0x8ba   : > { %v1692_v44 = vpack.c.b16 %v1691_v43, %v1691_v43 }
 0x8be   : > { %1620 = vrot.lane.b32.xlu1 %v1619_v36, %s3053_s10 }
 0x8c1   : > { %v1478_v37 = vpop.permute.xlu1 %1477 }
 0x8c2   : > { %v1487_v39 = vpack.c.bf16 %v1478_v37, %v1478_v37 }
 0x8c4   : > { %v1643_v40 = vunpack.c.l.b16 %v1487_v39 }
 0x8c6   : > { %v1644_v42 = vpack.c.b16 %v1643_v40, %v1643_v40  ;;  %v2286_v40 = vld [vmem:[#allocation17 + $0x8] sm:$0xff] }
 0x8c8   : > { %1645 = vrot.lane.b32.xlu0 %v1644_v42, %s3053_s10 }
 0x8cf   : > { %1693 = vrot.lane.b32.xlu2 %v1692_v44, %s3053_s10  ;;  %v2289_v44 = vld [vmem:[%s3719_s15 + $0x10] sm:$0xff]  ;;  %s1914_s10 = sshll.u32 %s1910_s5, 4  ;;  %s1915_s10 = int_to_ptr.hbm [resolvable:$true] %s1914_s10 }
 0x8d0   : > { %s2899_s17 = sshra.s32 %s1915_s10, 4  ;;  %s2900_s17 = int_to_ptr.hbm [resolvable:$true] %s2899_s17 }
 0x8d1   : > { %p2906_p11 = scmp.lt.s32.totalorder %s2900_s17, %s3721_s14 }
 0x8e0   : > { %v1571_v45 = vpop.xlane.xlu0 %1570 }
 0x8e1   : > { %v1581_v46 = vsub.f32 %v1509_v14, %v1571_v45 }
 0x8e3   : > { %v1585_v47 = vmul.f32 1.442695, %v1581_v46 }
 0x8e5   : > { %2573 = vpow2.f32 %v1585_v47 }
 0x8eb   : > { %v2574_v48 = vpop.eup %2573 }
 0x8ec   : > { %v1593_v49 = vsel %vm1033_vm11, %v2574_v48, 0.0 }
 0x8f2   : > { %1594 = vadd.xlane.f32.xlu0 %v1593_v49 }
 0x910   : > { %v1601_v50 = vpop.xlane.xlu1 %1600 }
 0x911   : > { %2575 = vrcp.f32 %v1601_v50 }
 0x917   : > { %v2576_v52 = vpop.eup %2575 }
 0x918   : > { %v1611_v53 = vmul.f32 %v2576_v52, %v2568_v7  ;;  %v2537_v52 = vld [vmem:[#allocation7 + $0x4] ss:$0 sm:$0xff] }
 0x91a   : > { %v1615_v58 = vpack.c.bf16 %v1611_v53, %v1611_v53 }
 0x922   : > { %v1604_v51 = vpop.xlane.xlu2 %1603 }
 0x923   : > { %2577 = vrcp.f32 %v1604_v51 }
 0x928   : > { %v1670_v54 = vpop.permute.xlu1 %1669 }
 0x929   : > { %v1675_v55 = vsel %vm1625_vm4, %v1670_v54, 0  ;;  %v2578_v59 = vpop.eup %2577  ;;  %v2538_v54 = vld [vmem:[#allocation7 + $0x5] ss:$0 sm:$0xff] }
 0x92a   : > { %v1598_v56 = vpop.xlane.xlu2 %1597  ;;  %1684 = vmatpush.bf16.msra.mxu3 %v1675_v55  ;;  %v1612_v61 = vmul.f32 %v2578_v59, %v2570_v28  ;;  %v2288_v59 = vld [vmem:[%s3719_s15 + $0x8] sm:$0xff] }
 0x92b   : > { %2579 = vrcp.f32 %v1598_v56 }
 0x92c   : > { %v1616_v0 = vpack.c.bf16 %v1612_v61, %v1612_v61  ;;  %v2539_v61 = vld [vmem:[%s3720_s21] ss:$0 sm:$0xff] }
 0x92d   : > { %2230 = vmatmul.msk.bf16.vlgmr.msra.gmra.mxu3 %vm1033_vm11, %v1615_v58 }
 0x930   : > { %v1621_v60 = vpop.permute.xlu1 %1620 }
 0x931   : > { %v1627_v62 = vsel %vm1625_vm4, %v1621_v60, 0  ;;  %v2580_v1 = vpop.eup %2579  ;;  %v2287_v60 = vld [vmem:[%s3719_s15] sm:$0xff] }
 0x932   : > { %v1694_v63 = vpop.permute.xlu2 %1693  ;;  %1636 = vmatpush.bf16.msra.mxu1 %v1627_v62  ;;  %v1610_v3 = vmul.f32 %v2580_v1, %v2572_v31 }
 0x933   : > { %v1699_v2 = vsel %vm1625_vm4, %v1694_v63, 0 }
 0x934   : > { %1708 = vmatpush.bf16.msrb.mxu0 %v1699_v2  ;;  %v1614_v6 = vpack.c.bf16 %v1610_v3, %v1610_v3  ;;  %v2540_v3 = vld [vmem:[#allocation7 + $0xe] ss:$0 sm:$0xff] }
 0x936   : > { %1760 = vmatpush.bf16.msrb.mxu1 %v2284_v20 }
 0x937   : > { %2231 = vmatmul.msk.bf16.vlgmr.msrb.gmra.mxu0 %vm1033_vm11, %v1616_v0 }
 0x93a   : > { %v1646_v4 = vpop.permute.xlu0 %1645  ;;  %1761 = vmatpush.bf16.msrb.mxu1 %v2283_v21 }
 0x93b   : > { %v1651_v5 = vsel %vm1625_vm4, %v1646_v4, 0 }
 0x93c   : > { %1660 = vmatpush.bf16.msra.mxu2 %v1651_v5 }
 0x93f   : > { %2229 = vmatmul.msk.bf16.vlgmr.msra.gmra.mxu2 %vm1033_vm11, %v1614_v6 }
 0x940   : > { %1832 = vmatpush.bf16.msrb.mxu2 %v2286_v40 }
 0x944   : > { %1833 = vmatpush.bf16.msrb.mxu2 %v2285_v41 }
 0x965   : > { %v1595_v8 = vpop.xlane.xlu0 %1594 }
 0x966   : > { %2581 = vrcp.f32 %v1595_v8 }
 0x96c   : > { %v2582_v9 = vpop.eup %2581 }
 0x96d   : > { %v1609_v10 = vmul.f32 %v2582_v9, %v2574_v48 }
 0x96f   : > { %v1613_v17 = vpack.c.bf16 %v1609_v10, %v1609_v10 }
 0x971   : > { %2228 = vmatmul.msk.bf16.vlgmr.msra.gmra.mxu1 %vm1033_vm11, %v1613_v17 }
 0x9b0   : > { %v1686_v11 = vpop.f32.mrf.mxu3 }
 0x9b1   : > { %1719 = vrot.lane.b32.xlu1 %v1686_v11, %s3054_s8  ;;  %s2901_s8 = scalar_lea.hbm %s2900_s17, 8 }
 0x9b2   : > { %p2902_p1 = scmp.ne.s32.totalorder %s2900_s17, %s2901_s8  ;;  %p2907_p2 = scmp.lt.s32.totalorder %s2905_s13, %s2901_s8 }
 0x9b4   : > { %v1710_v14 = vpop.f32.mrf.mxu0  ;;  %p2903_p3 = pnand %p2902_p1, %p3321_p12  ;;  %p2908_p4 = por %p2907_p2, %p2906_p11 }
 0x9b6   : > { %p2904_p9 = pneg %p2903_p3 }
 0x9b8   : > { %v1688_v13 = vpop.f32.mrf.mxu3  ;;  %p2909_p5 = pnand %p2908_p4, %p2904_p9 }
 0x9bc   : > { %v1712_v15 = vpop.f32.mrf.mxu0 }
 0x9c2   : > { %v1662_v16 = vpop.f32.mrf.mxu2 }
 0x9c3   : > { %1715 = vrot.lane.b32.xlu2 %v1662_v16, %s3055_s11 }
 0x9ca   : > { %v1664_v18 = vpop.f32.mrf.mxu2 }
 0x9cb   : > { %1723 = vrot.lane.b32.xlu2 %v1710_v14, %s3056_s24 }
 0x9ee   : > { %v1638_v7 = vpop.f32.mrf.mxu1 }
 0x9f6   : > { %v1640_v19 = vpop.f32.mrf.mxu1 }
 0xa1d   : > { %v1716_v22 = vpop.permute.xlu2 %1715 }
 0xa1e   : > { %v1726_v23 = vsel %vm1033_vm11, %v1638_v7, %v1716_v22 }
 0xa23   : > { %v1720_v24 = vpop.permute.xlu1 %1719 }
 0xa24   : > { %v1727_v25 = vsel %vm1125_vm13, %v1726_v23, %v1720_v24 }
 0xa25   : > { %v1724_v26 = vpop.permute.xlu2 %1723 }
 0xa26   : > { %v1728_v27 = vsel %vm1284_vm14, %v1727_v25, %v1724_v26 }
 0xa27   : > { %v1729_v28 = vpack.c.bf16 %v1728_v27, %v1728_v27 }
 0xa29   : > { %2240 = vmatmul.msk.bf16.vlgmr.msrb.gmra.mxu1 %vm780_vm0, %v1729_v28 }
 0xaa6   : > { %v1763_v30 = vpop.f32.mrf.mxu1 }
 0xaa7   : > { %v1764_v31 = vadd.f32 %v2536_v29, %v1763_v30 }
 0xaa9   : > { %v1767_v32 = vadd.f32 %v1764_v31, %v3489_v57  ;;  %v2290_v57 = vld [vmem:[%s3719_s15 + $0x18] sm:$0xff] }
 0xaaa   : > { %1886 = vmatpush.bf16.msrb.mxu3 %v2290_v57 }
 0xaab   : > { %v1772_v33 = vsel %vm780_vm0, %v1767_v32, 0.0 }
 0xaac   : > { %1773 = vadd.xlane.f32.xlu1 %v1772_v33 }
 0xaae   : > { %v1765_v34 = vpop.f32.mrf.mxu1  ;;  %1887 = vmatpush.bf16.msrb.mxu3 %v2289_v44 }
 0xab2   : > { %1888 = vmatpush.bf16.msrb.mxu3 %v2288_v59 }
 0xab6   : > { %1889 = vmatpush.bf16.msrb.mxu3 %v2287_v60 }
 0xb1f   : > { %v1774_v35 = vpop.xlane.xlu1 %1773 }
 0xb20   : > { %v1775_v36 = vmul.f32 %v1774_v35, %v3411_v12 }
 0xb22   : > { %v1776_v37 = vsub.f32 %v1767_v32, %v1775_v36 }
 0xb24   : > { %v1777_v38 = vmul.f32 %v1776_v37, %v1776_v37 }
 0xb26   : > { %v1778_v39 = vsel %vm780_vm0, %v1777_v38, 0.0 }
 0xb27   : > { %1779 = vadd.xlane.f32.xlu2 %v1778_v39 }
 0xb9a   : > { %v1780_v42 = vpop.xlane.xlu2 %1779 }
 0xb9b   : > { %v1781_v43 = vmul.f32 %v1780_v42, %v3411_v12 }
 0xb9d   : > { %v1782_v45 = vadd.f32 1e-06, %v1781_v43 }
 0xb9f   : > { %2583 = vrsqrt.f32 %v1782_v45  ;;  %vm1789_vm6 = vweird.f32 %v1782_v45 }
 0xba5   : > { %v2584_v46 = vpop.eup %2583 }
 0xba6   : > { %v1784_v47 = vmul.f32 %v2584_v46, %v1782_v45  ;;  %vm1790_vm5 = vweird.f32 %v2584_v46 }
 0xba7   : > { %vm1791_vm7 = vmor %vm1789_vm6, %vm1790_vm5 }
 0xba8   : > { %v1785_v48 = vmul.f32 %v2584_v46, %v1784_v47 }
 0xbaa   : > { %v1786_v49 = vmul.f32 0.5, %v1785_v48 }
 0xbac   : > { %v1787_v50 = vsub.f32 1.5, %v1786_v49 }
 0xbae   : > { %v1788_v51 = vmul.f32 %v2584_v46, %v1787_v50 }
 0xbb0   : > { %v1792_v53 = vsel %vm1791_vm7, %v2584_v46, %v1788_v51 }
 0xbb1   : > { %v1793_v12 = vmul.f32 %v1792_v53, %v1776_v37 }
 0xbb3   : > { %v1797_v55 = vmul.f32 %v2537_v52, %v1793_v12 }
 0xbb5   : > { %v1801_v56 = vadd.f32 %v2538_v54, %v1797_v55 }
 0xbb7   : > { %v1802_v58 = vpack.c.bf16 %v1801_v56, %v1801_v56 }
 0xbb9   : > { %2249 = vmatmul.msk.bf16.vlgmr.msrb.gmra.mxu2 %vm780_vm0, %v1802_v58 }
 0xc3c   : > { %v1835_v62 = vpop.f32.mrf.mxu2 }
 0xc3d   : > { %v1836_v63 = vadd.f32 %v2539_v61, %v1835_v62 }
 0xc3f   : > { %v1839_v2 = vmax.f32 %v1836_v63, 0.0 }
 0xc41   : > { %v1840_v0 = vpack.c.bf16 %v1839_v2, %v1839_v2 }
 0xc43   : > { %2266 = vmatmul.msk.bf16.vlgmr.msrb.gmra.mxu3 %vm1878_vm8, %v1840_v0 }
 0xc44   : > { %v1837_v1 = vpop.f32.mrf.mxu2 }
 0xcc6   : > { %v1891_v4 = vpop.f32.mrf.mxu3 }
 0xcc7   : > { %v1892_v5 = vadd.f32 %v2540_v3, %v1891_v4 }
 0xcc9   : > { %v1895_v6 = vadd.f32 %v1892_v5, %v1767_v32 }
 0xccb   : > { %1896 = vst.msk [vmem:[%s750_s1] sm:$0xff] %vm780_vm0, %v1895_v6 }
 0xccc   : > { %2912 = shalt.err (!%p2909_p5)
}
 0xccd   : > { %2327 = dma.vmem_to_hbm [thread:$0]  (%p3321_p12), %s1913_s9, 128, %s1915_s10, %s1898_s16  }
 0xcce   : > { %v1893_v8 = vpop.f32.mrf.mxu3 }
 0xccf PF: > { %s3723_s12 = sld [smem:[#allocation28_spill]]  ;;  %p2382_p6 = scmp.ge.s32.totalorder %s3031_s28, 2 }
 0xcd1   : > { %p2362_p8 = pnand %p2382_p6, %p3325_p7 }
 0xcd3   : > { %p2363_p10 = pneg %p2362_p8 }
 0xcd5   : > { %s1926_s6 = sand.u32 1, %s3723_s12  }
 0xcd6   : > { %s1927_s0 = scalar_lea.sflag [#allocation4], %s1926_s6 }
 0xcd7   : > { %2986 = dma.done.wait (%p2363_p10), %s1927_s0, 128  }
 0xcd8   : > { %2988 = vsyncadd (%p2363_p10), %s1927_s0, 4294967168  ;;  %s38_s28 = sadd.s32 1, %s3031_s28   ;;  %s3725_s29 = smov %s3338_s18 }
 0xcd9   : > { %p35_p13 = scmp.ge.s32.totalorder %s38_s28, 6   ;;  %s3726_s3 = sld [smem:[#allocation32_spill]] }
 0xcda   : > { %s3727_s2 = sld [smem:[#allocation33_spill]]  ;;  %s3728_s18 = smov %s2995_s19 }
 0xcdb   : > { %s3729_s19 = smov %s2999_s20  ;;  %s3730_s20 = smov %s3725_s29 }
 0xcdc   : > { %s3731_s21 = smov %s3007_s22  ;;  %s3732_s22 = smov %s3011_s23 }
 0xcdd   : > { %s3733_s23 = smov %s3335_s7  ;;  %s3734_s24 = smov %s3023_s26 }
 0xcde   : > { %s3735_s25 = smov %s3027_s27  ;;  %37 = sbr.rel (!%p35_p13) target bundleno = 32 (0x20), region = 193 }
 0xcdf   : > { %s3736_s26 = smov %s3726_s3 }
 0xce0   : > { %s3737_s27 = smov %s3727_s2 }
 0xce3   :  { %1933 = vsyncpa [#allocation3], 1 }
 0xce4   :  { %1935 = vsyncpa [#allocation3 + $0x1], 1 }
 0xce5   :  { %1936 = vsyncpa [#allocation6], 1 }
 0xce6   :  { %1938 = vsyncpa [#allocation6 + $0x1], 1 }
 0xce7   :  { %1939 = vsyncpa [#allocation9], 1 }
 0xce8   :  { %1940 = vsyncpa [#allocation12], 1 }
 0xce9   :  { %1941 = vsyncpa [#allocation15], 1 }
 0xcea   :  { %1942 = vsyncpa [#allocation18], 1 }
 0xceb   :  { %1943 = vsyncpa [#allocation4], 1 }
 0xcec   :  { %1945 = vsyncpa [#allocation4 + $0x1], 1 }

</bundles_post_ra>
